<compile_context>
chip_gen: v7x
topology: tpu7x:2x2x1
jax: 0.10.0
libtpu: 0.0.40
codegen_flags: <defaults>
</compile_context>

<pallas_src>
import math

import jax
import jax.numpy as jnp
import numpy as np
from jax.experimental import pallas as pl
from jax.experimental.pallas import tpu as pltpu

# ----------------------------- configuration ------------------------------
B = 2
IN_C = 16          # in_channels (content feature dim)
C = 32             # channels
OUT_C = 64         # out_channels
T_IN = 16          # content sequence length
T_F0 = 16          # f0 sequence length
N_BLOCKS = 2       # len(sampling_ratios)
N_F0_BINS = 64
GN_EPS = 1e-5

f0_max = 1100.0
f0_min = 50.0
f0_mel_max = 1127.0 * math.log(1.0 + f0_max / 700.0)
f0_mel_min = 1127.0 * math.log(1.0 + f0_min / 700.0)

# Row layout of the packed "small params" slab (shape (8, OUT_C), f32).
_ROW_BP = 0                    # content_in_proj bias            (cols 0:C)
_ROW_CB = 1                    # conv biases, rows 1 .. 1+NB-1   (cols 0:C)
_ROW_GG = 1 + N_BLOCKS         # GroupNorm gammas                (cols 0:C)
_ROW_GB = 1 + 2 * N_BLOCKS     # GroupNorm betas                 (cols 0:C)
_ROW_FB = 1 + 3 * N_BLOCKS     # final conv bias                 (cols 0:OUT_C)
_N_SMALL_ROWS = 2 + 3 * N_BLOCKS

# Packed (bf16) weight slab rows: [wp ; I_C] then the fused 3-tap conv weights.
_W_PROJ_ROWS = IN_C + C                           # 48
_W_ROWS = _W_PROJ_ROWS + 3 * C * N_BLOCKS         # 240


def f0_to_coarse(f0, f0_bin):
    """JAX port of the PyTorch helper (elementwise quantization; glue, not hot path)."""
    f0_mel = 1127.0 * jnp.log(1.0 + f0 / 700.0)
    a = (f0_bin - 2) / (f0_mel_max - f0_mel_min)
    b = f0_mel_min * a - 1.0
    f0_mel = jnp.where(f0_mel > 0, f0_mel * a - b, f0_mel)
    f0_coarse = jnp.round(f0_mel).astype(jnp.int32)
    f0_coarse = f0_coarse * (f0_coarse > 0).astype(jnp.int32)
    f0_coarse = f0_coarse + (f0_coarse < 1).astype(jnp.int32)
    f0_coarse = f0_coarse * (f0_coarse < f0_bin).astype(jnp.int32)
    f0_coarse = f0_coarse + (f0_coarse >= f0_bin).astype(jnp.int32) * (f0_bin - 1)
    return f0_coarse


# ------------------------------ Pallas kernel ------------------------------
def _regulator_kernel(ylens_ref,            # SMEM (B,) int32  (scalar prefetch)
                      xcat_ref,             # (B*T, IN_C+C) bf16   [content | f0 emb]
                      wmat_ref,             # (_W_ROWS, C) bf16    [wp ; I ; W3_0 ; W3_1]
                      fw_ref,               # (C, OUT_C) bf16      final 1x1 conv weight
                      small_ref,            # (8, OUT_C) f32       biases / GN affine
                      o_ref):               # (T, B*OUT_C) f32     lane-dense output
    BT = xcat_ref.shape[0]                  # bsz * t_out (batch folded into rows)
    T = o_ref.shape[0]                      # t_out
    bb = BT // T                            # static batch size
    inv_n = 1.0 / float(T * C)

    # --- parameter loads (single grid step, so these happen once) ---
    wproj = wmat_ref[0:_W_PROJ_ROWS, :]                                        # (48, C)
    w3 = [wmat_ref[_W_PROJ_ROWS + 3 * C * l: _W_PROJ_ROWS + 3 * C * (l + 1), :]  # (3C, C)
          for l in range(N_BLOCKS)]
    fw = fw_ref[...]                                                           # (C, OUT_C)
    bp = small_ref[_ROW_BP:_ROW_BP + 1, 0:C]
    cb = [small_ref[_ROW_CB + l:_ROW_CB + l + 1, 0:C] for l in range(N_BLOCKS)]
    gg = [small_ref[_ROW_GG + l:_ROW_GG + l + 1, 0:C] for l in range(N_BLOCKS)]
    gb = [small_ref[_ROW_GB + l:_ROW_GB + l + 1, 0:C] for l in range(N_BLOCKS)]
    fb = small_ref[_ROW_FB:_ROW_FB + 1, :]

    # --- hoisted row-index masks on the batch-folded (B*T, C) slab ---
    row = jax.lax.broadcasted_iota(jnp.int32, (BT, C), 0)
    # Conv zero-padding masks, also killing the batch seam rows so samples don't leak.
    m_prev = row != 0
    m_next = row != BT - 1
    for b in range(1, bb):
        m_prev = m_prev & (row != b * T)
        m_next = m_next & (row != b * T - 1)
    row_o = jax.lax.broadcasted_iota(jnp.int32, (T, OUT_C), 0)

    # Projection + f0-embedding add, folded into ONE matmul:
    #   xcat = [x | f0e],  wproj = [wp ; I_C]  ->  h = x@wp + f0e  (+ bias).
    h = jnp.dot(xcat_ref[...], wproj, preferred_element_type=jnp.float32) + bp

    for l in range(N_BLOCKS):
        # Conv1d(C, C, k=3, pad=1): build [h(t-1) | h(t) | h(t+1)] via XLU rolls with
        # seam-aware masks, then ONE fused (B*T, 3C) x (3C, C) bf16 matmul.
        h_m1 = jnp.where(m_prev, pltpu.roll(h, shift=1, axis=0), 0.0)
        h_p1 = jnp.where(m_next, pltpu.roll(h, shift=BT - 1, axis=0), 0.0)
        h3 = jnp.concatenate([h_m1, h, h_p1], axis=-1).astype(jnp.bfloat16)    # (BT, 3C)
        y = jnp.dot(h3, w3[l], preferred_element_type=jnp.float32) + cb[l]

        # GroupNorm(groups=1, C): per-sample one-pass f32 statistics over each (T, C)
        # slice of the folded slab, broadcast back with per-sample row selects.
        mu_map = jnp.zeros((BT, C), jnp.float32)
        rs_map = jnp.zeros((BT, C), jnp.float32)
        for b in range(bb):
            yb = y[b * T:(b + 1) * T]
            s1 = jnp.sum(yb)
            s2 = jnp.sum(yb * yb)
            mu = s1 * inv_n
            var = s2 * inv_n - mu * mu
            rs = jax.lax.rsqrt(var + GN_EPS)
            sel = (row >= b * T) & (row < (b + 1) * T)
            mu_map = jnp.where(sel, mu, mu_map)
            rs_map = jnp.where(sel, rs, rs_map)
        y = (y - mu_map) * rs_map * gg[l] + gb[l]

        # Mish via a single exp:  t = exp(-|y|)
        #   y >= 0: tanh(softplus(y)) = (1+2t) / (1+2t+2t^2)
        #   y <  0: tanh(softplus(y)) = (2t+t^2) / (2+2t+t^2)
        t = jnp.exp(-jnp.abs(y))
        t2 = t * t
        pos = y >= 0.0
        num = jnp.where(pos, 1.0 + 2.0 * t, 2.0 * t + t2)
        den = jnp.where(pos, 1.0 + 2.0 * t + 2.0 * t2, 2.0 + 2.0 * t + t2)
        h = y * num * pl.reciprocal(den, approx=True)

    # Final Conv1d(C, OUT_C, k=1) per sample + sequence_mask(ylens); the per-sample
    # (T, 64) results are lane-concatenated so the single store is a full, unmasked
    # 128-lane vst (lane-dense out_spec).
    outs = []
    for b in range(bb):
        hb = h[b * T:(b + 1) * T].astype(jnp.bfloat16)
        ob = jnp.dot(hb, fw, preferred_element_type=jnp.float32) + fb
        outs.append(jnp.where(row_o < ylens_ref[b], ob, 0.0))
    o_ref[...] = jnp.concatenate(outs, axis=-1).astype(o_ref.dtype)


# ------------------------------- wrappers -----------------------------------
def _pack_params(params):
    # bf16 weight slab: [wp ; I_C] (folds the f0-embedding add into the projection)
    # followed by the fused conv weights W3[l] = concat(cw[3l..3l+2], axis=0).
    eye = jnp.eye(C, dtype=jnp.float32)
    wproj = jnp.concatenate([params["wp"], eye], axis=0)                       # (48, C)
    w3 = [jnp.concatenate([params["cw"][3 * l], params["cw"][3 * l + 1],
                           params["cw"][3 * l + 2]], axis=0) for l in range(N_BLOCKS)]
    wmat = jnp.concatenate([wproj] + w3, axis=0).astype(jnp.bfloat16)          # (240, C)
    fw = params["fw"].astype(jnp.bfloat16)                                     # (C, OUT_C)

    # f32 small-parameter slab (8, OUT_C): biases + GN affine -> one DMA.
    def pad64(v):
        return jnp.pad(v, ((0, 0), (0, OUT_C - v.shape[1])))
    small = jnp.concatenate(
        [pad64(params["bp"])]
        + [pad64(params["cb"][l]) for l in range(N_BLOCKS)]
        + [pad64(params["gg"][l]) for l in range(N_BLOCKS)]
        + [pad64(params["gb"][l]) for l in range(N_BLOCKS)]
        + [params["fb"]], axis=0)
    return wmat, fw, small


def interpolate_regulator(params, x, ylens, f0, t_out):
    """Forward pass.  x: (B, T_IN, IN_C) f32, ylens: (B,) int32, f0: (B, T_F0) f32.
    Returns (out (B, t_out, OUT_C), olens)."""
    bsz = x.shape[0]

    # F.interpolate(..., mode='nearest') == row gather, src = floor(dst * T_in / T_out). Glue.
    idx_x = (jnp.arange(t_out) * x.shape[1]) // t_out
    x_i = x[:, idx_x, :]                                      # (B, t_out, IN_C)

    # f0 condition path (quantize + embedding lookup + nearest interpolation) -- glue.
    q = jnp.clip(f0_to_coarse(f0, N_F0_BINS), 0, N_F0_BINS - 1)
    f0e = params["f0_table"][q]                               # (B, T_F0, C)
    idx_f = (jnp.arange(t_out) * f0.shape[1]) // t_out
    f0e_i = f0e[:, idx_f, :]                                  # (B, t_out, C)

    # Single bf16 activation slab with the batch folded into the row axis.
    xcat = jnp.concatenate([x_i, f0e_i], axis=-1).reshape(bsz * t_out, IN_C + C)
    xcat = xcat.astype(jnp.bfloat16)                          # (B*T, 48)

    wmat, fw, small = _pack_params(params)

    # Whole batch in one grid step on ALL chips (v5e/v6e/v7x): the work is tiny, so
    # splitting across TensorCores only duplicates DMA + pipeline overhead.
    grid_spec = pltpu.PrefetchScalarGridSpec(
        num_scalar_prefetch=1,
        grid=(1,),
        in_specs=[
            pl.BlockSpec((bsz * t_out, IN_C + C), lambda g, yl: (0, 0)),   # activations
            pl.BlockSpec((_W_ROWS, C), lambda g, yl: (0, 0)),              # packed weights (bf16)
            pl.BlockSpec((C, OUT_C), lambda g, yl: (0, 0)),                # final W (bf16)
            pl.BlockSpec((_N_SMALL_ROWS, OUT_C), lambda g, yl: (0, 0)),    # biases / GN affine
        ],
        out_specs=pl.BlockSpec((t_out, bsz * OUT_C), lambda g, yl: (0, 0)),
    )

    raw = pl.pallas_call(
        _regulator_kernel,
        out_shape=jax.ShapeDtypeStruct((t_out, bsz * OUT_C), jnp.float32),
        grid_spec=grid_spec,
        compiler_params=pltpu.CompilerParams(dimension_semantics=("arbitrary",)),
    )(ylens.astype(jnp.int32), xcat, wmat, fw, small)

    # Un-pack the lane-concatenated samples: (t_out, B*OUT_C) -> (B, t_out, OUT_C).
    out = raw.reshape(t_out, bsz, OUT_C).transpose(1, 0, 2)
    return out, ylens


# --------------------------- params + reference ----------------------------
def init_params(key):
    ks = jax.random.split(key, 9)
    p = {}
    # content_in_proj: Linear(IN_C, C); stored pre-transposed (IN_C, C).
    p["wp"] = 0.1 * jax.random.normal(ks[0], (IN_C, C), jnp.float32)
    p["bp"] = 0.1 * jax.random.normal(ks[1], (1, C), jnp.float32)
    # Conv1d(C, C, 3) per block; cw[3*l + k] = W_l[:, :, k]^T  (C_in, C_out).
    p["cw"] = 0.1 * jax.random.normal(ks[2], (3 * N_BLOCKS, C, C), jnp.float32)
    p["cb"] = 0.1 * jax.random.normal(ks[3], (N_BLOCKS, 1, C), jnp.float32)
    # GroupNorm affine params.
    p["gg"] = 1.0 + 0.1 * jax.random.normal(ks[4], (N_BLOCKS, 1, C), jnp.float32)
    p["gb"] = 0.1 * jax.random.normal(ks[5], (N_BLOCKS, 1, C), jnp.float32)
    # Final Conv1d(C, OUT_C, 1); stored pre-transposed (C, OUT_C).
    p["fw"] = 0.1 * jax.random.normal(ks[6], (C, OUT_C), jnp.float32)
    p["fb"] = 0.1 * jax.random.normal(ks[7], (1, OUT_C), jnp.float32)
    # f0_embedding table.
    p["f0_table"] = 0.1 * jax.random.normal(ks[8], (N_F0_BINS, C), jnp.float32)
    # NOTE: self.embedding / self.mask_token / self.f0_mask are unused by this
    # forward configuration (is_discrete=False, f0 provided), so they are omitted.
    return p


def reference_forward(params, x, ylens, f0, t_out):
    """Pure-JAX reference mirroring the PyTorch forward exactly (f32)."""
    idx_x = (jnp.arange(t_out) * x.shape[1]) // t_out
    h = x[:, idx_x, :] @ params["wp"] + params["bp"][0]
    q = jnp.clip(f0_to_coarse(f0, N_F0_BINS), 0, N_F0_BINS - 1)
    f0e = params["f0_table"][q]
    idx_f = (jnp.arange(t_out) * f0.shape[1]) // t_out
    h = h + f0e[:, idx_f, :]
    for l in range(N_BLOCKS):
        hm1 = jnp.pad(h, ((0, 0), (1, 0), (0, 0)))[:, :t_out, :]
        hp1 = jnp.pad(h, ((0, 0), (0, 1), (0, 0)))[:, 1:, :]
        y = (hm1 @ params["cw"][3 * l + 0] + h @ params["cw"][3 * l + 1]
             + hp1 @ params["cw"][3 * l + 2] + params["cb"][l])
        mu = jnp.mean(y, axis=(1, 2), keepdims=True)
        var = jnp.mean((y - mu) ** 2, axis=(1, 2), keepdims=True)
        y = (y - mu) / jnp.sqrt(var + GN_EPS)
        y = y * params["gg"][l] + params["gb"][l]
        sp = jnp.maximum(y, 0.0) + jnp.log(1.0 + jnp.exp(-jnp.abs(y)))
        h = y * jnp.tanh(sp)
    out = h @ params["fw"] + params["fb"]
    mask = (jnp.arange(t_out)[None, :] < ylens[:, None])[..., None]
    return out * mask


# ---------------------------------- main -----------------------------------
if __name__ == "__main__":
    key = jax.random.PRNGKey(0)
    kp, kx, kf = jax.random.split(key, 3)
    params = init_params(kp)

    x = jax.random.normal(kx, (B, T_IN, IN_C), jnp.float32)
    f0 = jax.random.uniform(kf, (B, T_F0), jnp.float32, minval=60.0, maxval=900.0)
    ylens_np = np.array([24, 18], dtype=np.int32)
    ylens = jnp.asarray(ylens_np)
    t_out = int(ylens_np.max())        # ylens.max(); static for output shapes

    out, olens = interpolate_regulator(params, x, ylens, f0, t_out)
    out = jax.block_until_ready(out)

    ref = reference_forward(params, x, ylens, f0, t_out)
    assert out.shape == (B, t_out, OUT_C)
    np.testing.assert_allclose(np.asarray(out), np.asarray(ref), rtol=2e-2, atol=2e-2)
    print("KERNEL_OK")
</pallas_src>

<mosaic_0001>
module attributes {stable_mosaic.version = 11 : i64} {
  func.func @_regulator_kernel(%arg0: i32, %arg1: memref<2xi32, #tpu.memory_space<smem>>, %arg2: memref<48x48xbf16, #tpu.memory_space<vmem>>, %arg3: memref<240x32xbf16, #tpu.memory_space<vmem>>, %arg4: memref<32x64xbf16, #tpu.memory_space<vmem>>, %arg5: memref<8x64xf32, #tpu.memory_space<vmem>>, %arg6: memref<24x128xf32, #tpu.memory_space<vmem>>) attributes {dimension_semantics = [#tpu.dimension_semantics<arbitrary>], iteration_bounds = array<i64: 1>, scalar_prefetch = 1 : i64, scratch_operands = 0 : i64, tpu.core_type = #tpu.core_type<tc>, window_params = [{pipeline_mode = #tpu.pipeline_mode<synchronous>, transform_indices = @transform_0, window_bounds = array<i64: 48, 48>}, {pipeline_mode = #tpu.pipeline_mode<synchronous>, transform_indices = @transform_1, window_bounds = array<i64: 240, 32>}, {pipeline_mode = #tpu.pipeline_mode<synchronous>, transform_indices = @transform_2, window_bounds = array<i64: 32, 64>}, {pipeline_mode = #tpu.pipeline_mode<synchronous>, transform_indices = @transform_3, window_bounds = array<i64: 8, 64>}, {pipeline_mode = #tpu.pipeline_mode<synchronous>, transform_indices = @transform_4, window_bounds = array<i64: 24, 128>}]} {
    %c0 = arith.constant 0 : index
    %c0_0 = arith.constant 0 : index
    %0 = vector.load %arg3[%c0, %c0_0] : memref<240x32xbf16, #tpu.memory_space<vmem>>, vector<48x32xbf16>
    %c48 = arith.constant 48 : index
    %c0_1 = arith.constant 0 : index
    %1 = vector.load %arg3[%c48, %c0_1] : memref<240x32xbf16, #tpu.memory_space<vmem>>, vector<96x32xbf16>
    %c144 = arith.constant 144 : index
    %c0_2 = arith.constant 0 : index
    %2 = vector.load %arg3[%c144, %c0_2] : memref<240x32xbf16, #tpu.memory_space<vmem>>, vector<96x32xbf16>
    %c0_3 = arith.constant 0 : index
    %c0_4 = arith.constant 0 : index
    %3 = vector.load %arg4[%c0_3, %c0_4] : memref<32x64xbf16, #tpu.memory_space<vmem>>, vector<32x64xbf16>
    %c0_5 = arith.constant 0 : index
    %c0_6 = arith.constant 0 : index
    %4 = vector.load %arg5[%c0_5, %c0_6] : memref<8x64xf32, #tpu.memory_space<vmem>>, vector<1x32xf32>
    %c1 = arith.constant 1 : index
    %c0_7 = arith.constant 0 : index
    %5 = vector.load %arg5[%c1, %c0_7] : memref<8x64xf32, #tpu.memory_space<vmem>>, vector<1x32xf32>
    %c2 = arith.constant 2 : index
    %c0_8 = arith.constant 0 : index
    %6 = vector.load %arg5[%c2, %c0_8] : memref<8x64xf32, #tpu.memory_space<vmem>>, vector<1x32xf32>
    %c3 = arith.constant 3 : index
    %c0_9 = arith.constant 0 : index
    %7 = vector.load %arg5[%c3, %c0_9] : memref<8x64xf32, #tpu.memory_space<vmem>>, vector<1x32xf32>
    %c4 = arith.constant 4 : index
    %c0_10 = arith.constant 0 : index
    %8 = vector.load %arg5[%c4, %c0_10] : memref<8x64xf32, #tpu.memory_space<vmem>>, vector<1x32xf32>
    %c5 = arith.constant 5 : index
    %c0_11 = arith.constant 0 : index
    %9 = vector.load %arg5[%c5, %c0_11] : memref<8x64xf32, #tpu.memory_space<vmem>>, vector<1x32xf32>
    %c6 = arith.constant 6 : index
    %c0_12 = arith.constant 0 : index
    %10 = vector.load %arg5[%c6, %c0_12] : memref<8x64xf32, #tpu.memory_space<vmem>>, vector<1x32xf32>
    %c7 = arith.constant 7 : index
    %c0_13 = arith.constant 0 : index
    %11 = vector.load %arg5[%c7, %c0_13] : memref<8x64xf32, #tpu.memory_space<vmem>>, vector<1x64xf32>
    %12 = tpu.iota {dimensions = array<i32: 0>} : vector<48x32xi32>
    %c0_i32 = arith.constant 0 : i32
    %13 = vector.broadcast %c0_i32 : i32 to vector<48x32xi32>
    %14 = arith.cmpi ne, %12, %13 : vector<48x32xi32>
    %c47_i32 = arith.constant 47 : i32
    %15 = vector.broadcast %c47_i32 : i32 to vector<48x32xi32>
    %16 = arith.cmpi ne, %12, %15 : vector<48x32xi32>
    %c24_i32 = arith.constant 24 : i32
    %17 = vector.broadcast %c24_i32 : i32 to vector<48x32xi32>
    %18 = arith.cmpi ne, %12, %17 : vector<48x32xi32>
    %19 = arith.andi %14, %18 : vector<48x32xi1>
    %c23_i32 = arith.constant 23 : i32
    %20 = vector.broadcast %c23_i32 : i32 to vector<48x32xi32>
    %21 = arith.cmpi ne, %12, %20 : vector<48x32xi32>
    %22 = arith.andi %16, %21 : vector<48x32xi1>
    %23 = tpu.iota {dimensions = array<i32: 0>} : vector<24x64xi32>
    %c0_14 = arith.constant 0 : index
    %c0_15 = arith.constant 0 : index
    %24 = vector.load %arg2[%c0_14, %c0_15] : memref<48x48xbf16, #tpu.memory_space<vmem>>, vector<48x48xbf16>
    %cst = arith.constant dense<0.000000e+00> : vector<48x32xf32>
    %25 = tpu.matmul %24, %0, %cst {dimension_numbers = #tpu.dot_dimension_numbers<[1], [0], [0], [1], [0, 0, 1, 1], [], []>} : vector<48x48xbf16>, vector<48x32xbf16>, vector<48x32xf32> -> vector<48x32xf32>
    %26 = vector.broadcast %4 : vector<1x32xf32> to vector<48x32xf32>
    %27 = arith.addf %25, %26 : vector<48x32xf32>
    %c1_i32 = arith.constant 1 : i32
    %28 = tpu.dynamic_rotate %27 by %c1_i32 dim 0 : vector<48x32xf32>, i32 -> vector<48x32xf32>
    %cst_16 = arith.constant 0.000000e+00 : f32
    %29 = vector.broadcast %cst_16 : f32 to vector<48x32xf32>
    %30 = arith.select %19, %28, %29 : vector<48x32xi1>, vector<48x32xf32>
    %c47_i32_17 = arith.constant 47 : i32
    %31 = tpu.dynamic_rotate %27 by %c47_i32_17 dim 0 : vector<48x32xf32>, i32 -> vector<48x32xf32>
    %cst_18 = arith.constant 0.000000e+00 : f32
    %32 = vector.broadcast %cst_18 : f32 to vector<48x32xf32>
    %33 = arith.select %22, %31, %32 : vector<48x32xi1>, vector<48x32xf32>
    %34 = tpu.concatenate %30, %27, %33 in 1 : vector<48x32xf32>, vector<48x32xf32>, vector<48x32xf32> -> vector<48x96xf32>
    %35 = arith.truncf %34 : vector<48x96xf32> to vector<48x96xbf16>
    %cst_19 = arith.constant dense<0.000000e+00> : vector<48x32xf32>
    %36 = tpu.matmul %35, %1, %cst_19 {dimension_numbers = #tpu.dot_dimension_numbers<[1], [0], [0], [1], [0, 0, 1, 1], [], []>} : vector<48x96xbf16>, vector<96x32xbf16>, vector<48x32xf32> -> vector<48x32xf32>
    %37 = vector.broadcast %5 : vector<1x32xf32> to vector<48x32xf32>
    %38 = arith.addf %36, %37 : vector<48x32xf32>
    %cst_20 = arith.constant 0.000000e+00 : f32
    %39 = vector.broadcast %cst_20 : f32 to vector<48x32xf32>
    %cst_21 = arith.constant 0.000000e+00 : f32
    %40 = vector.broadcast %cst_21 : f32 to vector<48x32xf32>
    %41 = vector.extract_strided_slice %38 {offsets = [0, 0], sizes = [24, 32], strides = [1, 1]} : vector<48x32xf32> to vector<24x32xf32>
    %42 = vector.shape_cast %41 : vector<24x32xf32> to vector<1x24x32xf32>
    %cst_22 = arith.constant dense<0.000000e+00> : vector<1xf32>
    %43 = vector.multi_reduction <add>, %42, %cst_22 [1, 2] : vector<1x24x32xf32> to vector<1xf32>
    %44 = vector.shape_cast %43 : vector<1xf32> to vector<1x1x1xf32>
    %45 = vector.extract %44[0, 0, 0] : f32 from vector<1x1x1xf32>
    %46 = arith.mulf %41, %41 : vector<24x32xf32>
    %47 = vector.shape_cast %46 : vector<24x32xf32> to vector<1x24x32xf32>
    %cst_23 = arith.constant dense<0.000000e+00> : vector<1xf32>
    %48 = vector.multi_reduction <add>, %47, %cst_23 [1, 2] : vector<1x24x32xf32> to vector<1xf32>
    %49 = vector.shape_cast %48 : vector<1xf32> to vector<1x1x1xf32>
    %50 = vector.extract %49[0, 0, 0] : f32 from vector<1x1x1xf32>
    %cst_24 = arith.constant 0.00130208337 : f32
    %51 = arith.mulf %45, %cst_24 : f32
    %cst_25 = arith.constant 0.00130208337 : f32
    %52 = arith.mulf %50, %cst_25 : f32
    %53 = arith.mulf %51, %51 : f32
    %54 = arith.subf %52, %53 : f32
    %cst_26 = arith.constant 9.99999974E-6 : f32
    %55 = arith.addf %54, %cst_26 : f32
    %56 = math.rsqrt %55 : f32
    %c0_i32_27 = arith.constant 0 : i32
    %57 = vector.broadcast %c0_i32_27 : i32 to vector<48x32xi32>
    %58 = arith.cmpi sge, %12, %57 : vector<48x32xi32>
    %c24_i32_28 = arith.constant 24 : i32
    %59 = vector.broadcast %c24_i32_28 : i32 to vector<48x32xi32>
    %60 = arith.cmpi slt, %12, %59 : vector<48x32xi32>
    %61 = arith.andi %58, %60 : vector<48x32xi1>
    %62 = vector.broadcast %51 : f32 to vector<48x32xf32>
    %63 = arith.select %61, %62, %39 : vector<48x32xi1>, vector<48x32xf32>
    %64 = vector.broadcast %56 : f32 to vector<48x32xf32>
    %65 = arith.select %61, %64, %40 : vector<48x32xi1>, vector<48x32xf32>
    %66 = vector.extract_strided_slice %38 {offsets = [24, 0], sizes = [24, 32], strides = [1, 1]} : vector<48x32xf32> to vector<24x32xf32>
    %67 = vector.shape_cast %66 : vector<24x32xf32> to vector<1x24x32xf32>
    %cst_29 = arith.constant dense<0.000000e+00> : vector<1xf32>
    %68 = vector.multi_reduction <add>, %67, %cst_29 [1, 2] : vector<1x24x32xf32> to vector<1xf32>
    %69 = vector.shape_cast %68 : vector<1xf32> to vector<1x1x1xf32>
    %70 = vector.extract %69[0, 0, 0] : f32 from vector<1x1x1xf32>
    %71 = arith.mulf %66, %66 : vector<24x32xf32>
    %72 = vector.shape_cast %71 : vector<24x32xf32> to vector<1x24x32xf32>
    %cst_30 = arith.constant dense<0.000000e+00> : vector<1xf32>
    %73 = vector.multi_reduction <add>, %72, %cst_30 [1, 2] : vector<1x24x32xf32> to vector<1xf32>
    %74 = vector.shape_cast %73 : vector<1xf32> to vector<1x1x1xf32>
    %75 = vector.extract %74[0, 0, 0] : f32 from vector<1x1x1xf32>
    %cst_31 = arith.constant 0.00130208337 : f32
    %76 = arith.mulf %70, %cst_31 : f32
    %cst_32 = arith.constant 0.00130208337 : f32
    %77 = arith.mulf %75, %cst_32 : f32
    %78 = arith.mulf %76, %76 : f32
    %79 = arith.subf %77, %78 : f32
    %cst_33 = arith.constant 9.99999974E-6 : f32
    %80 = arith.addf %79, %cst_33 : f32
    %81 = math.rsqrt %80 : f32
    %c24_i32_34 = arith.constant 24 : i32
    %82 = vector.broadcast %c24_i32_34 : i32 to vector<48x32xi32>
    %83 = arith.cmpi sge, %12, %82 : vector<48x32xi32>
    %c48_i32 = arith.constant 48 : i32
    %84 = vector.broadcast %c48_i32 : i32 to vector<48x32xi32>
    %85 = arith.cmpi slt, %12, %84 : vector<48x32xi32>
    %86 = arith.andi %83, %85 : vector<48x32xi1>
    %87 = vector.broadcast %76 : f32 to vector<48x32xf32>
    %88 = arith.select %86, %87, %63 : vector<48x32xi1>, vector<48x32xf32>
    %89 = vector.broadcast %81 : f32 to vector<48x32xf32>
    %90 = arith.select %86, %89, %65 : vector<48x32xi1>, vector<48x32xf32>
    %91 = arith.subf %38, %88 : vector<48x32xf32>
    %92 = arith.mulf %91, %90 : vector<48x32xf32>
    %93 = vector.broadcast %7 : vector<1x32xf32> to vector<48x32xf32>
    %94 = arith.mulf %92, %93 : vector<48x32xf32>
    %95 = vector.broadcast %9 : vector<1x32xf32> to vector<48x32xf32>
    %96 = arith.addf %94, %95 : vector<48x32xf32>
    %97 = math.absf %96 : vector<48x32xf32>
    %cst_35 = arith.constant 0.000000e+00 : f32
    %98 = vector.broadcast %cst_35 : f32 to vector<48x32xf32>
    %99 = arith.subf %98, %97 : vector<48x32xf32>
    %100 = math.exp %99 : vector<48x32xf32>
    %101 = arith.mulf %100, %100 : vector<48x32xf32>
    %cst_36 = arith.constant 0.000000e+00 : f32
    %102 = vector.broadcast %cst_36 : f32 to vector<48x32xf32>
    %103 = arith.cmpf oge, %96, %102 : vector<48x32xf32>
    %cst_37 = arith.constant 2.000000e+00 : f32
    %104 = vector.broadcast %cst_37 : f32 to vector<48x32xf32>
    %105 = arith.mulf %104, %100 : vector<48x32xf32>
    %cst_38 = arith.constant 1.000000e+00 : f32
    %106 = vector.broadcast %cst_38 : f32 to vector<48x32xf32>
    %107 = arith.addf %106, %105 : vector<48x32xf32>
    %cst_39 = arith.constant 2.000000e+00 : f32
    %108 = vector.broadcast %cst_39 : f32 to vector<48x32xf32>
    %109 = arith.mulf %108, %100 : vector<48x32xf32>
    %110 = arith.addf %109, %101 : vector<48x32xf32>
    %111 = arith.select %103, %107, %110 : vector<48x32xi1>, vector<48x32xf32>
    %cst_40 = arith.constant 2.000000e+00 : f32
    %112 = vector.broadcast %cst_40 : f32 to vector<48x32xf32>
    %113 = arith.mulf %112, %100 : vector<48x32xf32>
    %cst_41 = arith.constant 1.000000e+00 : f32
    %114 = vector.broadcast %cst_41 : f32 to vector<48x32xf32>
    %115 = arith.addf %114, %113 : vector<48x32xf32>
    %cst_42 = arith.constant 2.000000e+00 : f32
    %116 = vector.broadcast %cst_42 : f32 to vector<48x32xf32>
    %117 = arith.mulf %116, %101 : vector<48x32xf32>
    %118 = arith.addf %115, %117 : vector<48x32xf32>
    %cst_43 = arith.constant 2.000000e+00 : f32
    %119 = vector.broadcast %cst_43 : f32 to vector<48x32xf32>
    %120 = arith.mulf %119, %100 : vector<48x32xf32>
    %cst_44 = arith.constant 2.000000e+00 : f32
    %121 = vector.broadcast %cst_44 : f32 to vector<48x32xf32>
    %122 = arith.addf %121, %120 : vector<48x32xf32>
    %123 = arith.addf %122, %101 : vector<48x32xf32>
    %124 = arith.select %103, %118, %123 : vector<48x32xi1>, vector<48x32xf32>
    %125 = arith.mulf %96, %111 : vector<48x32xf32>
    %126 = tpu.reciprocal %124 {approx = true} : vector<48x32xf32> -> vector<48x32xf32>
    %127 = arith.mulf %125, %126 : vector<48x32xf32>
    %c1_i32_45 = arith.constant 1 : i32
    %128 = tpu.dynamic_rotate %127 by %c1_i32_45 dim 0 : vector<48x32xf32>, i32 -> vector<48x32xf32>
    %cst_46 = arith.constant 0.000000e+00 : f32
    %129 = vector.broadcast %cst_46 : f32 to vector<48x32xf32>
    %130 = arith.select %19, %128, %129 : vector<48x32xi1>, vector<48x32xf32>
    %c47_i32_47 = arith.constant 47 : i32
    %131 = tpu.dynamic_rotate %127 by %c47_i32_47 dim 0 : vector<48x32xf32>, i32 -> vector<48x32xf32>
    %cst_48 = arith.constant 0.000000e+00 : f32
    %132 = vector.broadcast %cst_48 : f32 to vector<48x32xf32>
    %133 = arith.select %22, %131, %132 : vector<48x32xi1>, vector<48x32xf32>
    %134 = tpu.concatenate %130, %127, %133 in 1 : vector<48x32xf32>, vector<48x32xf32>, vector<48x32xf32> -> vector<48x96xf32>
    %135 = arith.truncf %134 : vector<48x96xf32> to vector<48x96xbf16>
    %cst_49 = arith.constant dense<0.000000e+00> : vector<48x32xf32>
    %136 = tpu.matmul %135, %2, %cst_49 {dimension_numbers = #tpu.dot_dimension_numbers<[1], [0], [0], [1], [0, 0, 1, 1], [], []>} : vector<48x96xbf16>, vector<96x32xbf16>, vector<48x32xf32> -> vector<48x32xf32>
    %137 = vector.broadcast %6 : vector<1x32xf32> to vector<48x32xf32>
    %138 = arith.addf %136, %137 : vector<48x32xf32>
    %cst_50 = arith.constant 0.000000e+00 : f32
    %139 = vector.broadcast %cst_50 : f32 to vector<48x32xf32>
    %cst_51 = arith.constant 0.000000e+00 : f32
    %140 = vector.broadcast %cst_51 : f32 to vector<48x32xf32>
    %141 = vector.extract_strided_slice %138 {offsets = [0, 0], sizes = [24, 32], strides = [1, 1]} : vector<48x32xf32> to vector<24x32xf32>
    %142 = vector.shape_cast %141 : vector<24x32xf32> to vector<1x24x32xf32>
    %cst_52 = arith.constant dense<0.000000e+00> : vector<1xf32>
    %143 = vector.multi_reduction <add>, %142, %cst_52 [1, 2] : vector<1x24x32xf32> to vector<1xf32>
    %144 = vector.shape_cast %143 : vector<1xf32> to vector<1x1x1xf32>
    %145 = vector.extract %144[0, 0, 0] : f32 from vector<1x1x1xf32>
    %146 = arith.mulf %141, %141 : vector<24x32xf32>
    %147 = vector.shape_cast %146 : vector<24x32xf32> to vector<1x24x32xf32>
    %cst_53 = arith.constant dense<0.000000e+00> : vector<1xf32>
    %148 = vector.multi_reduction <add>, %147, %cst_53 [1, 2] : vector<1x24x32xf32> to vector<1xf32>
    %149 = vector.shape_cast %148 : vector<1xf32> to vector<1x1x1xf32>
    %150 = vector.extract %149[0, 0, 0] : f32 from vector<1x1x1xf32>
    %cst_54 = arith.constant 0.00130208337 : f32
    %151 = arith.mulf %145, %cst_54 : f32
    %cst_55 = arith.constant 0.00130208337 : f32
    %152 = arith.mulf %150, %cst_55 : f32
    %153 = arith.mulf %151, %151 : f32
    %154 = arith.subf %152, %153 : f32
    %cst_56 = arith.constant 9.99999974E-6 : f32
    %155 = arith.addf %154, %cst_56 : f32
    %156 = math.rsqrt %155 : f32
    %c0_i32_57 = arith.constant 0 : i32
    %157 = vector.broadcast %c0_i32_57 : i32 to vector<48x32xi32>
    %158 = arith.cmpi sge, %12, %157 : vector<48x32xi32>
    %c24_i32_58 = arith.constant 24 : i32
    %159 = vector.broadcast %c24_i32_58 : i32 to vector<48x32xi32>
    %160 = arith.cmpi slt, %12, %159 : vector<48x32xi32>
    %161 = arith.andi %158, %160 : vector<48x32xi1>
    %162 = vector.broadcast %151 : f32 to vector<48x32xf32>
    %163 = arith.select %161, %162, %139 : vector<48x32xi1>, vector<48x32xf32>
    %164 = vector.broadcast %156 : f32 to vector<48x32xf32>
    %165 = arith.select %161, %164, %140 : vector<48x32xi1>, vector<48x32xf32>
    %166 = vector.extract_strided_slice %138 {offsets = [24, 0], sizes = [24, 32], strides = [1, 1]} : vector<48x32xf32> to vector<24x32xf32>
    %167 = vector.shape_cast %166 : vector<24x32xf32> to vector<1x24x32xf32>
    %cst_59 = arith.constant dense<0.000000e+00> : vector<1xf32>
    %168 = vector.multi_reduction <add>, %167, %cst_59 [1, 2] : vector<1x24x32xf32> to vector<1xf32>
    %169 = vector.shape_cast %168 : vector<1xf32> to vector<1x1x1xf32>
    %170 = vector.extract %169[0, 0, 0] : f32 from vector<1x1x1xf32>
    %171 = arith.mulf %166, %166 : vector<24x32xf32>
    %172 = vector.shape_cast %171 : vector<24x32xf32> to vector<1x24x32xf32>
    %cst_60 = arith.constant dense<0.000000e+00> : vector<1xf32>
    %173 = vector.multi_reduction <add>, %172, %cst_60 [1, 2] : vector<1x24x32xf32> to vector<1xf32>
    %174 = vector.shape_cast %173 : vector<1xf32> to vector<1x1x1xf32>
    %175 = vector.extract %174[0, 0, 0] : f32 from vector<1x1x1xf32>
    %cst_61 = arith.constant 0.00130208337 : f32
    %176 = arith.mulf %170, %cst_61 : f32
    %cst_62 = arith.constant 0.00130208337 : f32
    %177 = arith.mulf %175, %cst_62 : f32
    %178 = arith.mulf %176, %176 : f32
    %179 = arith.subf %177, %178 : f32
    %cst_63 = arith.constant 9.99999974E-6 : f32
    %180 = arith.addf %179, %cst_63 : f32
    %181 = math.rsqrt %180 : f32
    %c24_i32_64 = arith.constant 24 : i32
    %182 = vector.broadcast %c24_i32_64 : i32 to vector<48x32xi32>
    %183 = arith.cmpi sge, %12, %182 : vector<48x32xi32>
    %c48_i32_65 = arith.constant 48 : i32
    %184 = vector.broadcast %c48_i32_65 : i32 to vector<48x32xi32>
    %185 = arith.cmpi slt, %12, %184 : vector<48x32xi32>
    %186 = arith.andi %183, %185 : vector<48x32xi1>
    %187 = vector.broadcast %176 : f32 to vector<48x32xf32>
    %188 = arith.select %186, %187, %163 : vector<48x32xi1>, vector<48x32xf32>
    %189 = vector.broadcast %181 : f32 to vector<48x32xf32>
    %190 = arith.select %186, %189, %165 : vector<48x32xi1>, vector<48x32xf32>
    %191 = arith.subf %138, %188 : vector<48x32xf32>
    %192 = arith.mulf %191, %190 : vector<48x32xf32>
    %193 = vector.broadcast %8 : vector<1x32xf32> to vector<48x32xf32>
    %194 = arith.mulf %192, %193 : vector<48x32xf32>
    %195 = vector.broadcast %10 : vector<1x32xf32> to vector<48x32xf32>
    %196 = arith.addf %194, %195 : vector<48x32xf32>
    %197 = math.absf %196 : vector<48x32xf32>
    %cst_66 = arith.constant 0.000000e+00 : f32
    %198 = vector.broadcast %cst_66 : f32 to vector<48x32xf32>
    %199 = arith.subf %198, %197 : vector<48x32xf32>
    %200 = math.exp %199 : vector<48x32xf32>
    %201 = arith.mulf %200, %200 : vector<48x32xf32>
    %cst_67 = arith.constant 0.000000e+00 : f32
    %202 = vector.broadcast %cst_67 : f32 to vector<48x32xf32>
    %203 = arith.cmpf oge, %196, %202 : vector<48x32xf32>
    %cst_68 = arith.constant 2.000000e+00 : f32
    %204 = vector.broadcast %cst_68 : f32 to vector<48x32xf32>
    %205 = arith.mulf %204, %200 : vector<48x32xf32>
    %cst_69 = arith.constant 1.000000e+00 : f32
    %206 = vector.broadcast %cst_69 : f32 to vector<48x32xf32>
    %207 = arith.addf %206, %205 : vector<48x32xf32>
    %cst_70 = arith.constant 2.000000e+00 : f32
    %208 = vector.broadcast %cst_70 : f32 to vector<48x32xf32>
    %209 = arith.mulf %208, %200 : vector<48x32xf32>
    %210 = arith.addf %209, %201 : vector<48x32xf32>
    %211 = arith.select %203, %207, %210 : vector<48x32xi1>, vector<48x32xf32>
    %cst_71 = arith.constant 2.000000e+00 : f32
    %212 = vector.broadcast %cst_71 : f32 to vector<48x32xf32>
    %213 = arith.mulf %212, %200 : vector<48x32xf32>
    %cst_72 = arith.constant 1.000000e+00 : f32
    %214 = vector.broadcast %cst_72 : f32 to vector<48x32xf32>
    %215 = arith.addf %214, %213 : vector<48x32xf32>
    %cst_73 = arith.constant 2.000000e+00 : f32
    %216 = vector.broadcast %cst_73 : f32 to vector<48x32xf32>
    %217 = arith.mulf %216, %201 : vector<48x32xf32>
    %218 = arith.addf %215, %217 : vector<48x32xf32>
    %cst_74 = arith.constant 2.000000e+00 : f32
    %219 = vector.broadcast %cst_74 : f32 to vector<48x32xf32>
    %220 = arith.mulf %219, %200 : vector<48x32xf32>
    %cst_75 = arith.constant 2.000000e+00 : f32
    %221 = vector.broadcast %cst_75 : f32 to vector<48x32xf32>
    %222 = arith.addf %221, %220 : vector<48x32xf32>
    %223 = arith.addf %222, %201 : vector<48x32xf32>
    %224 = arith.select %203, %218, %223 : vector<48x32xi1>, vector<48x32xf32>
    %225 = arith.mulf %196, %211 : vector<48x32xf32>
    %226 = tpu.reciprocal %224 {approx = true} : vector<48x32xf32> -> vector<48x32xf32>
    %227 = arith.mulf %225, %226 : vector<48x32xf32>
    %228 = vector.extract_strided_slice %227 {offsets = [0, 0], sizes = [24, 32], strides = [1, 1]} : vector<48x32xf32> to vector<24x32xf32>
    %229 = arith.truncf %228 : vector<24x32xf32> to vector<24x32xbf16>
    %cst_76 = arith.constant dense<0.000000e+00> : vector<24x64xf32>
    %230 = tpu.matmul %229, %3, %cst_76 {dimension_numbers = #tpu.dot_dimension_numbers<[1], [0], [0], [1], [0, 0, 1, 1], [], []>} : vector<24x32xbf16>, vector<32x64xbf16>, vector<24x64xf32> -> vector<24x64xf32>
    %231 = vector.broadcast %11 : vector<1x64xf32> to vector<24x64xf32>
    %232 = arith.addf %230, %231 : vector<24x64xf32>
    %c0_77 = arith.constant 0 : index
    %233 = memref.load %arg1[%c0_77] : memref<2xi32, #tpu.memory_space<smem>>
    %234 = vector.broadcast %233 : i32 to vector<24x64xi32>
    %235 = arith.cmpi slt, %23, %234 : vector<24x64xi32>
    %cst_78 = arith.constant 0.000000e+00 : f32
    %236 = vector.broadcast %cst_78 : f32 to vector<24x64xf32>
    %237 = arith.select %235, %232, %236 : vector<24x64xi1>, vector<24x64xf32>
    %238 = vector.extract_strided_slice %227 {offsets = [24, 0], sizes = [24, 32], strides = [1, 1]} : vector<48x32xf32> to vector<24x32xf32>
    %239 = arith.truncf %238 : vector<24x32xf32> to vector<24x32xbf16>
    %cst_79 = arith.constant dense<0.000000e+00> : vector<24x64xf32>
    %240 = tpu.matmul %239, %3, %cst_79 {dimension_numbers = #tpu.dot_dimension_numbers<[1], [0], [0], [1], [0, 0, 1, 1], [], []>} : vector<24x32xbf16>, vector<32x64xbf16>, vector<24x64xf32> -> vector<24x64xf32>
    %241 = vector.broadcast %11 : vector<1x64xf32> to vector<24x64xf32>
    %242 = arith.addf %240, %241 : vector<24x64xf32>
    %c1_80 = arith.constant 1 : index
    %243 = memref.load %arg1[%c1_80] : memref<2xi32, #tpu.memory_space<smem>>
    %244 = vector.broadcast %243 : i32 to vector<24x64xi32>
    %245 = arith.cmpi slt, %23, %244 : vector<24x64xi32>
    %cst_81 = arith.constant 0.000000e+00 : f32
    %246 = vector.broadcast %cst_81 : f32 to vector<24x64xf32>
    %247 = arith.select %245, %242, %246 : vector<24x64xi1>, vector<24x64xf32>
    %248 = tpu.concatenate %237, %247 in 1 : vector<24x64xf32>, vector<24x64xf32> -> vector<24x128xf32>
    %c0_82 = arith.constant 0 : index
    %c0_83 = arith.constant 0 : index
    %249 = vector.load %arg6[%c0_82, %c0_83] : memref<24x128xf32, #tpu.memory_space<vmem>>, vector<24x128xf32>
    tpu.vector_store %arg6[%c0_82, %c0_83], %248 {strides = array<i32>} : memref<24x128xf32, #tpu.memory_space<vmem>>, vector<24x128xf32>,
    return
  }
  func.func @transform_0(%arg0: i32, %arg1: memref<2xi32, #tpu.memory_space<smem>>) -> (i32, i32) {
    %c0_i32 = arith.constant 0 : i32
    %c0_i32_0 = arith.constant 0 : i32
    %c0_i32_1 = arith.constant 0 : i32
    return %c0_i32, %c0_i32_0 : i32, i32
  }
  func.func @transform_1(%arg0: i32, %arg1: memref<2xi32, #tpu.memory_space<smem>>) -> (i32, i32) {
    %c0_i32 = arith.constant 0 : i32
    %c0_i32_0 = arith.constant 0 : i32
    %c0_i32_1 = arith.constant 0 : i32
    return %c0_i32, %c0_i32_0 : i32, i32
  }
  func.func @transform_2(%arg0: i32, %arg1: memref<2xi32, #tpu.memory_space<smem>>) -> (i32, i32) {
    %c0_i32 = arith.constant 0 : i32
    %c0_i32_0 = arith.constant 0 : i32
    %c0_i32_1 = arith.constant 0 : i32
    return %c0_i32, %c0_i32_0 : i32, i32
  }
  func.func @transform_3(%arg0: i32, %arg1: memref<2xi32, #tpu.memory_space<smem>>) -> (i32, i32) {
    %c0_i32 = arith.constant 0 : i32
    %c0_i32_0 = arith.constant 0 : i32
    %c0_i32_1 = arith.constant 0 : i32
    return %c0_i32, %c0_i32_0 : i32, i32
  }
  func.func @transform_4(%arg0: i32, %arg1: memref<2xi32, #tpu.memory_space<smem>>) -> (i32, i32) {
    %c0_i32 = arith.constant 0 : i32
    %c0_i32_0 = arith.constant 0 : i32
    %c0_i32_1 = arith.constant 0 : i32
    return %c0_i32, %c0_i32_0 : i32, i32
  }
}

</mosaic_0001>

<bundles_post_ra>
// kernel: tpu_custom_call.1
= control target key start
LH: loop header
LB: loop body
LE: loop exit
PB: predicated region body
PF: predicated region fallthrough
CT: control target
= control target key end

     0   :  { %s2216_s0 = inlined_call_operand.vmem [shape: s32[2], index: 0, kind: input, shape index: {}]   ;;  %s2217_s1 = inlined_call_operand.vmem [shape: bf16[48,48], index: 1, kind: input, shape index: {}]   ;;  %s2218_s2 = inlined_call_operand.vmem [shape: bf16[240,32], index: 2, kind: input, shape index: {}]   ;;  %s2219_s3 = inlined_call_operand.vmem [shape: bf16[32,64], index: 3, kind: input, shape index: {}]   ;;  %s2220_s4 = inlined_call_operand.vmem [shape: f32[8,64], index: 4, kind: input, shape index: {}]   ;;  %s2221_s5 = inlined_call_operand.hbm [shape: f32[24,128], index: 5, kind: output, shape index: {}]  }
   0x1   :  { %s10_s20 = sshll.u32 %s2216_s0, 4  ;;  %s11_s20 = int_to_ptr.vmem [resolvable:$true] %s10_s20 }
   0x2   :  { %s1666_s21 = scalar_lea.vmem %s11_s20, 16  ;;  %p1671_p1 = scmp.lt.s32.totalorder %s11_s20, %s11_s20 }
   0x3   :  { %p1667_p0 = scmp.ne.s32.totalorder %s11_s20, %s1666_s21  ;;  %p1672_p2 = scmp.lt.s32.totalorder %s1666_s21, %s1666_s21 }
   0x5   :  { %p1673_p3 = por %p1672_p2, %p1671_p1 }
   0x7   :  { %p1674_p4 = pnand %p1673_p3, %p1667_p0 }
   0x9   :  { %1677 = shalt.err (!%p1674_p4)  }
   0xa   :  { %s1704_s22 = smov [#allocation3]  }
   0xb   :  { %13 = dma.vmem_to_smem %s11_s20, 16, %s1704_s22, [#allocation2] }
   0xc   :  { %1700 = dma.done.wait [#allocation2], 16 }
   0xd   :  { %1701 = vsyncadd [#allocation2], 4294967280 }
   0xe   :  { %15 = sfence }
   0xf   :  { %v1590_v0 = vld [vmem:[%s2218_s2] sm:$0xff]   ;;  %v1705_v1 = vmov 0.0   ;;  %v1591_v2 = vld [vmem:[%s2218_s2 + $0x8] sm:$0xff]   ;;  %vm1706_vm0 = vmmov 0   ;;  %v1592_v3 = vld [vmem:[%s2218_s2 + $0x10] sm:$0xff]   ;;  %vm154_vm1 = vcmask 392192  }
  0x10   :  { %1416 = vmatprep.subr.bf16.mxu0 %v1705_v1  ;;  %1434 = vmatprep.subr.bf16.mxu1 %v1705_v1  ;;  %v1593_v4 = vld [vmem:[%s2217_s1] sm:$0xff]  }
  0x11   :  { %1417 = vmatpush3.bf16.msra.mxu0 %v1590_v0  ;;  %1422 = vmatprep.mubr.msk.bf16.mxu0 %vm1706_vm0, %v1705_v1 }
  0x12   :  { %1418 = vmatprep.subr.bf16.mxu0 %v1705_v1  ;;  %1446 = vmatprep.mubr.msk.bf16.mxu1 %vm1706_vm0, %v1705_v1 }
  0x15   :  { %1419 = vmatpush3.bf16.msra.mxu0 %v1591_v2 }
  0x16   :  { %1420 = vmatprep.subr.bf16.mxu0 %v1705_v1 }
  0x19   :  { %1421 = vmatpush3.bf16.msra.mxu0 %v1592_v3 }
  0x1a   :  { %1458 = vmatprep.subr.bf16.mxu0 %v1705_v1 }
  0x1c   :  { %1423 = vmatmul.mubr.msk.bf16.vlgmr.msra.gmra.mrb[0].mxu0 %vm154_vm1, %v1593_v4 }
  0x1d   :  { %1426 = vmatprep.mubr.msk.bf16.mxu0 %vm1706_vm0, %v1705_v1 }
  0x1e   :  { %16 = vsyncpa [#allocation5], 0  ;;  %v1594_v5 = vld [vmem:[%s2217_s1 + $0x8] sm:$0xff]   ;;  %v1595_v6 = vld [vmem:[%s2217_s1 + $0x10] sm:$0xff]   ;;  %v68_v11 = vlaneseq  ;;  %s1707_s22 = smov 32   ;;  %s1708_s23 = smov 64  }
  0x1f   :  { %v1596_v7 = vld [vmem:[%s2218_s2 + $0x18] sm:$0xff]   ;;  %v1597_v8 = vld [vmem:[%s2218_s2 + $0x20] sm:$0xff]   ;;  %v1598_v9 = vld [vmem:[%s2218_s2 + $0x28] sm:$0xff]   ;;  %vm307_vm7 = vcmask 261120   ;;  %vm314_vm8 = vcmask 523264   ;;  %vm364_vm9 = vcmask 785408  }
  0x20   :  { %1435 = vmatpush3.bf16.msra.mxu1 %v1596_v7  ;;  %v1599_v10 = vld [vmem:[%s2218_s2 + $0x30] sm:$0xff]   ;;  %v1600_v12 = vld [vmem:[%s2218_s2 + $0x38] sm:$0xff]   ;;  %v1342_v13 = vld [vmem:[%s2220_s4] ss:$0 sm:$0xff]  ;;  %v1800_v15 = vshrl.u32 %v68_v11, 7 }
  0x21   :  { %1436 = vmatprep.subr.bf16.mxu1 %v1705_v1  ;;  %v1601_v22 = vld [vmem:[%s2218_s2 + $0x40] sm:$0xff]  }
  0x22   :  { %vm246_vm2 = vcmp.lt.s32.totalorder %v1800_v15, 7  ;;  %vm227_vm3 = vcmp.lt.s32.totalorder %v1800_v15, 1  ;;  %v1819_v37 = vadd.s32 16, %v1800_v15  ;;  %v1832_v47 = vadd.s32 40, %v1800_v15 }
  0x23   :  { %vm75_vm6 = vcmp.ne.s32.totalorder %v1800_v15, 0 }
  0x24   :  { %1427 = vmatmul.mubr.msk.bf16.gmra.mrb[4].mxu0 %vm154_vm1, %v1594_v5  ;;  %1437 = vmatpush3.bf16.msra.mxu1 %v1597_v8  ;;  %vm101_vm4 = vcmp.ne.s32.totalorder %v1819_v37, 23  ;;  %vm86_vm5 = vcmp.ne.s32.totalorder %v1832_v47, 47 }
  0x25   :  { %1430 = vmatprep.mubr.msk.bf16.mxu0 %vm1706_vm0, %v1705_v1  ;;  %1438 = vmatprep.subr.bf16.mxu1 %v1705_v1 }
  0x28   :  { %1439 = vmatpush3.bf16.msra.mxu1 %v1598_v9 }
  0x29   :  { %1440 = vmatprep.subr.bf16.mxu1 %v1705_v1 }
  0x2c   :  { %1431 = vmatmul.mubr.msk.bf16.gmra.mrb[8].mxu0 %vm154_vm1, %v1595_v6  ;;  %1441 = vmatpush3.bf16.msra.mxu1 %v1599_v10 }
  0x2d   :  { %1470 = vmatprep.mubr.msk.bf16.mxu0 %vm1706_vm0, %v1705_v1  ;;  %1442 = vmatprep.subr.bf16.mxu1 %v1705_v1 }
  0x30   :  { %1443 = vmatpush3.bf16.msra.mxu1 %v1600_v12 }
  0x31   :  { %1444 = vmatprep.subr.bf16.mxu1 %v1705_v1 }
  0x34   :  { %1445 = vmatpush3.bf16.msra.mxu1 %v1601_v22 }
  0xef   :  { %v198_v14 = vpop.f32.mrb[0].mxu0 }
  0xf0   :  { %v1802_v16 = vadd.f32 %v1342_v13, %v198_v14  ;;  %v1424_v17 = vpop.f32.mrb[1].mxu0  ;;  %v1861_v14 = vadd.s32 24, %v1800_v15 }
  0xf1   :  { %v201_v18 = vpop.f32.mrb[2].mxu0 }
  0xf2   :  { %v202_v19 = vadd.f32 %v1342_v13, %v201_v18  ;;  %v1425_v20 = vpop.f32.mrb[3].mxu0  ;;  %v221_v21 = vrot.slane %v1802_v16, 7  ;;  %v240_v23 = vrot.slane %v1802_v16, 1  ;;  %vm90_vm10 = vcmp.ne.s32.totalorder %v1861_v14, 24 }
  0xf4   :  { %v222_v24 = vrot.slane %v202_v19, 7  ;;  %v241_v25 = vrot.slane %v202_v19, 1  ;;  %v1530_v26 = vpack.i.bf16 %v202_v19, %v1802_v16 }
  0xf6   :  { %1531 = vrot.lane.b32.xlu0 %v1530_v26, %s1707_s22  ;;  %v251_v27 = vsel %vm246_vm2, %v240_v23, %v241_v25  ;;  %v232_v28 = vsel %vm227_vm3, %v221_v21, %v222_v24 }
  0xf7   :  { %v206_v29 = vpop.f32.mrb[4].mxu0 }
  0xf8   :  { %v207_v30 = vadd.f32 %v1342_v13, %v206_v29  ;;  %v1428_v31 = vpop.f32.mrb[5].mxu0 }
  0xf9   :  { %v209_v32 = vpop.f32.mrb[6].mxu0 }
  0xfa   :  { %v223_v33 = vrot.slane %v207_v30, 7  ;;  %v242_v34 = vrot.slane %v207_v30, 1  ;;  %v210_v35 = vadd.f32 %v1342_v13, %v209_v32  ;;  %v1429_v36 = vpop.f32.mrb[7].mxu0 }
  0xfc   :  { %v224_v38 = vrot.slane %v210_v35, 7  ;;  %v243_v39 = vrot.slane %v210_v35, 1  ;;  %v1540_v40 = vpack.i.bf16 %v210_v35, %v207_v30  ;;  %v250_v41 = vsel %vm246_vm2, %v241_v25, %v242_v34 }
  0xfd   :  { %v1535_v42 = vpack.i.bf16 %v250_v41, %v251_v27  ;;  %v231_v43 = vsel %vm227_vm3, %v222_v24, %v223_v33 }
  0xfe   :  { %1541 = vrot.lane.b32.xlu1 %v1540_v40, %s1707_s22  ;;  %v249_v44 = vsel %vm246_vm2, %v242_v34, %v243_v39  ;;  %v230_v45 = vsel %vm227_vm3, %v223_v33, %v224_v38 }
  0xff   :  { %1536 = vrot.lane.b32.xlu0 %v1535_v42, %s1708_s23  ;;  %v214_v46 = vpop.f32.mrb[8].mxu0  ;;  %v255_v55 = vsel %vm101_vm4, %v249_v44, 0.0  ;;  %v237_v24 = vsel %vm90_vm10, %v230_v45, 0.0 }
 0x100   :  { %v215_v48 = vadd.f32 %v1342_v13, %v214_v46  ;;  %v1432_v49 = vpop.f32.mrb[9].mxu0 }
 0x101   :  { %v217_v50 = vpop.f32.mrb[10].mxu0 }
 0x102   :  { %v225_v51 = vrot.slane %v215_v48, 7  ;;  %v244_v52 = vrot.slane %v215_v48, 1  ;;  %v218_v53 = vadd.f32 %v1342_v13, %v217_v50  ;;  %v1433_v54 = vpop.f32.mrb[11].mxu0 }
 0x104   :  { %v226_v56 = vrot.slane %v218_v53, 7  ;;  %v245_v57 = vrot.slane %v218_v53, 1  ;;  %v1550_v58 = vpack.i.bf16 %v218_v53, %v215_v48  ;;  %v248_v59 = vsel %vm246_vm2, %v243_v39, %v244_v52 }
 0x105   :  { %v1545_v60 = vpack.i.bf16 %v248_v59, %v255_v55  ;;  %v229_v61 = vsel %vm227_vm3, %v224_v38, %v225_v51 }
 0x106   :  { %1551 = vrot.lane.b32.xlu0 %v1550_v58, %s1707_s22  ;;  %v247_v62 = vsel %vm246_vm2, %v244_v52, %v245_v57  ;;  %v252_v63 = vsel %vm246_vm2, %v245_v57, %v240_v23  ;;  %v233_v0 = vsel %vm227_vm3, %v226_v56, %v221_v21  ;;  %v228_v2 = vsel %vm227_vm3, %v225_v51, %v226_v56 }
 0x107   :  { %1546 = vrot.lane.b32.xlu1 %v1545_v60, %s1708_s23  ;;  %v258_v3 = vsel %vm86_vm5, %v252_v63, 0.0  ;;  %v234_v9 = vsel %vm75_vm6, %v233_v0, 0.0 }
 0x108   :  { %v1555_v4 = vpack.i.bf16 %v258_v3, %v247_v62 }
 0x10b   :  { %1556 = vrot.lane.b32.xlu1 %v1555_v4, %s1708_s23 }
 0x168   :  { %v1532_v5 = vpop.permute.xlu0 %1531 }
 0x169   :  { %v1534_v6 = vunpack.i.h.bf16 %v1532_v5  ;;  %v1533_v7 = vunpack.i.l.bf16 %v1532_v5 }
 0x16b   :  { %v308_v12 = vsel %vm307_vm7, %v234_v9, %v1533_v7  ;;  %v309_v13 = vsel %vm307_vm7, %v232_v28, %v1534_v6 }
 0x170   :  { %v1542_v16 = vpop.permute.xlu1 %1541 }
 0x171   :  { %v1537_v8 = vpop.permute.xlu0 %1536  ;;  %v1544_v20 = vunpack.i.h.bf16 %v1542_v16  ;;  %v1543_v21 = vunpack.i.l.bf16 %v1542_v16 }
 0x172   :  { %v1539_v10 = vunpack.i.h.bf16 %v1537_v8  ;;  %v1538_v11 = vunpack.i.l.bf16 %v1537_v8 }
 0x173   :  { %v310_v27 = vsel %vm307_vm7, %v231_v43, %v1543_v21  ;;  %v311_v28 = vsel %vm307_vm7, %v237_v24, %v1544_v20  ;;  %v1352_v43 = vld [vmem:[%s2220_s4 + $0x1] ss:$0 sm:$0xff] }
 0x174   :  { %v316_v17 = vsel %vm314_vm8, %v309_v13, %v1539_v10  ;;  %v315_v18 = vsel %vm314_vm8, %v308_v12, %v1538_v11 }
 0x175   :  { %v321_v19 = vpack.c.bf16 %v316_v17, %v315_v18 }
 0x177   :  { %1447 = vmatmul.mubr.msk.bf16.vlgmr.msra.gmra.mrb[0].mxu1 %vm364_vm9, %v321_v19 }
 0x178   :  { %v1552_v22 = vpop.permute.xlu0 %1551  ;;  %1450 = vmatprep.mubr.msk.bf16.mxu1 %vm1706_vm0, %v1705_v1 }
 0x179   :  { %v1547_v23 = vpop.permute.xlu1 %1546  ;;  %v1554_v29 = vunpack.i.h.bf16 %v1552_v22  ;;  %v1553_v30 = vunpack.i.l.bf16 %v1552_v22 }
 0x17a   :  { %v1549_v25 = vunpack.i.h.bf16 %v1547_v23  ;;  %v1548_v26 = vunpack.i.l.bf16 %v1547_v23 }
 0x17b   :  { %v312_v38 = vsel %vm307_vm7, %v229_v61, %v1553_v30  ;;  %v313_v39 = vsel %vm307_vm7, %v228_v2, %v1554_v29 }
 0x17c   :  { %v318_v31 = vsel %vm314_vm8, %v311_v28, %v1549_v25  ;;  %v317_v32 = vsel %vm314_vm8, %v310_v27, %v1548_v26 }
 0x17d   :  { %v322_v33 = vpack.c.bf16 %v318_v31, %v317_v32  ;;  %v1557_v34 = vpop.permute.xlu1 %1556 }
 0x17e   :  { %v1559_v35 = vunpack.i.h.bf16 %v1557_v34  ;;  %v1558_v36 = vunpack.i.l.bf16 %v1557_v34 }
 0x17f   :  { %1451 = vmatmul.mubr.msk.bf16.gmra.mrb[4].mxu1 %vm364_vm9, %v322_v33 }
 0x180   :  { %v319_v40 = vsel %vm314_vm8, %v312_v38, %v1558_v36  ;;  %v320_v41 = vsel %vm314_vm8, %v313_v39, %v1559_v35  ;;  %1454 = vmatprep.mubr.msk.bf16.mxu1 %vm1706_vm0, %v1705_v1 }
 0x181   :  { %v323_v42 = vpack.c.bf16 %v320_v41, %v319_v40 }
 0x187   :  { %1455 = vmatmul.mubr.msk.bf16.gmra.mrb[8].mxu1 %vm364_vm9, %v323_v42 }
 0x24a   :  { %v408_v44 = vpop.f32.mrb[0].mxu1 }
 0x24b   :  { %v1448_v45 = vpop.f32.mrb[1].mxu1  ;;  %v1886_v48 = vadd.f32 %v1352_v43, %v408_v44 }
 0x24c   :  { %v411_v46 = vpop.f32.mrb[2].mxu1 }
 0x24d   :  { %v1888_v49 = vadd.f32 %v1352_v43, %v411_v46  ;;  %v1449_v50 = vpop.f32.mrb[3].mxu1  ;;  %v445_v52 = vmul.f32 %v1886_v48, %v1886_v48  ;;  %v431_v57 = vsel %vm307_vm7, %v1886_v48, 0.0 }
 0x24f   :  { %v446_v51 = vmul.f32 %v1888_v49, %v1888_v49  ;;  %v432_v53 = vsel %vm307_vm7, %v1888_v49, 0.0  ;;  %v448_v0 = vsel %vm307_vm7, %v445_v52, 0.0 }
 0x250   :  { %v433_v60 = vadd.f32 %v432_v53, %v431_v57 }
 0x251   :  { %v449_v58 = vsel %vm307_vm7, %v446_v51, 0.0 }
 0x252   :  { %v416_v54 = vpop.f32.mrb[4].mxu1  ;;  %v450_v3 = vadd.f32 %v449_v58, %v448_v0 }
 0x253   :  { %v1896_v55 = vadd.f32 %v1352_v43, %v416_v54  ;;  %v1452_v56 = vpop.f32.mrb[5].mxu1 }
 0x254   :  { %v419_v59 = vpop.f32.mrb[6].mxu1 }
 0x255   :  { %v1453_v61 = vpop.f32.mrb[7].mxu1  ;;  %v434_v62 = vsel %vm307_vm7, %v1896_v55, 0.0  ;;  %v447_v63 = vmul.f32 %v1896_v55, %v1896_v55  ;;  %v1906_v4 = vadd.f32 %v1352_v43, %v419_v59 }
 0x256   :  { %v435_v2 = vadd.f32 %v434_v62, %v433_v60 }
 0x257   :  { %v451_v5 = vsel %vm307_vm7, %v447_v63, 0.0  ;;  %v516_v8 = vmul.f32 %v1906_v4, %v1906_v4  ;;  %v502_v17 = vsel %vm307_vm7, %v1906_v4, 0.0 }
 0x258   :  { %436 = vadd.xlane.f32.xlu0 %v435_v2  ;;  %v452_v6 = vadd.f32 %v451_v5, %v450_v3  ;;  %v1602_v5 = vld [vmem:[%s2218_s2 + $0x48] sm:$0xff]  }
 0x259   :  { %v519_v22 = vsel %vm307_vm7, %v516_v8, 0.0  ;;  %1459 = vmatpush3.bf16.msra.mxu0 %v1602_v5 }
 0x25a   :  { %453 = vadd.xlane.f32.xlu1 %v452_v6  ;;  %v424_v7 = vpop.f32.mrb[8].mxu1  ;;  %v1937_v6 = vld [vmem:[%s2220_s4 + $0x3] ss:$0 sm:$0xff]  ;;  %1460 = vmatprep.subr.bf16.mxu0 %v1705_v1 }
 0x25b   :  { %v1911_v9 = vadd.f32 %v1352_v43, %v424_v7  ;;  %v1456_v10 = vpop.f32.mrb[9].mxu1 }
 0x25c   :  { %v427_v11 = vpop.f32.mrb[10].mxu1 }
 0x25d   :  { %v517_v12 = vmul.f32 %v1911_v9, %v1911_v9  ;;  %v1915_v13 = vadd.f32 %v1352_v43, %v427_v11  ;;  %v1457_v16 = vpop.f32.mrb[11].mxu1  ;;  %v503_v18 = vsel %vm307_vm7, %v1911_v9, 0.0 }
 0x25e   :  { %v504_v19 = vadd.f32 %v503_v18, %v502_v17 }
 0x25f   :  { %v505_v20 = vsel %vm307_vm7, %v1915_v13, 0.0  ;;  %v518_v21 = vmul.f32 %v1915_v13, %v1915_v13  ;;  %v520_v23 = vsel %vm307_vm7, %v517_v12, 0.0 }
 0x260   :  { %v506_v24 = vadd.f32 %v505_v20, %v504_v19  ;;  %v521_v25 = vadd.f32 %v520_v23, %v519_v22  ;;  %v1604_v20 = vld [vmem:[%s2218_s2 + $0x58] sm:$0xff]  }
 0x261   :  { %v522_v26 = vsel %vm307_vm7, %v518_v21, 0.0 }
 0x262   :  { %507 = vadd.xlane.f32.xlu0 %v506_v24  ;;  %v523_v27 = vadd.f32 %v522_v26, %v521_v25 }
 0x266   :  { %524 = vadd.xlane.f32.xlu0 %v523_v27  ;;  %v1605_v27 = vld [vmem:[%s2218_s2 + $0x60] sm:$0xff]  }
 0x2e5   :  { %v437_v28 = vpop.xlane.xlu0 %436 }
 0x2e6   :  { %v438_v29 = vrot.slane %v437_v28, 4 }
 0x2e7   :  { %v454_v30 = vpop.xlane.xlu1 %453 }
 0x2e8   :  { %v439_v31 = vadd.f32 %v438_v29, %v437_v28  ;;  %v455_v32 = vrot.slane %v454_v30, 4 }
 0x2ea   :  { %v440_v33 = vrot.slane %v439_v31, 2  ;;  %v456_v34 = vadd.f32 %v455_v32, %v454_v30 }
 0x2ec   :  { %v457_v35 = vrot.slane %v456_v34, 2  ;;  %v441_v36 = vadd.f32 %v440_v33, %v439_v31 }
 0x2ee   :  { %v442_v38 = vrot.slane %v441_v36, 1  ;;  %v458_v39 = vadd.f32 %v457_v35, %v456_v34 }
 0x2ef   :  { %v508_v43 = vpop.xlane.xlu0 %507 }
 0x2f0   :  { %v443_v40 = vadd.f32 %v442_v38, %v441_v36  ;;  %v459_v41 = vrot.slane %v458_v39, 1  ;;  %v509_v45 = vrot.slane %v508_v43, 4 }
 0x2f2   :  { %1498 = vpush %v443_v40  ;;  %v460_v42 = vadd.f32 %v459_v41, %v458_v39  ;;  %v510_v50 = vadd.f32 %v509_v45, %v508_v43 }
 0x2f3   :  { %v525_v44 = vpop.xlane.xlu0 %524 }
 0x2f4   :  { %1500 = vpush %v460_v42  ;;  %v526_v46 = vrot.slane %v525_v44, 4  ;;  %v511_v52 = vrot.slane %v510_v50, 2 }
 0x2f6   :  { %v527_v51 = vadd.f32 %v526_v46, %v525_v44  ;;  %v512_v56 = vadd.f32 %v511_v52, %v510_v50 }
 0x2f8   :  { %v528_v53 = vrot.slane %v527_v51, 2  ;;  %v513_v58 = vrot.slane %v512_v56, 1 }
 0x2fa   :  { %v529_v57 = vadd.f32 %v528_v53, %v527_v51  ;;  %v514_v61 = vadd.f32 %v513_v58, %v512_v56 }
 0x2fc   :  { %v530_v59 = vrot.slane %v529_v57, 1 }
 0x2fe   :  { %v531_v62 = vadd.f32 %v530_v59, %v529_v57 }
 0x323   :  { %s1499_s25 = spop %1498 }
 0x324   :  { %s462_s26 = smul.f32 0.0013020834, %s1499_s25 }
 0x325   :  { %s1501_s27 = spop %1500 }
 0x326   :  { %s464_s28 = smul.f32 %s462_s26, %s462_s26  ;;  %v488_v63 = vstv %s462_s26 }
 0x327   :  { %s463_s29 = smul.f32 0.0013020834, %s1501_s27  ;;  %v573_v0 = vsub.f32 %v1886_v48, %v488_v63  ;;  %v574_v2 = vsub.f32 %v1888_v49, %v488_v63  ;;  %v575_v3 = vsub.f32 %v1896_v55, %v488_v63  ;;  %v1603_v48 = vld [vmem:[%s2218_s2 + $0x50] sm:$0xff]   ;;  %v1947_v49 = vld [vmem:[%s2220_s4 + $0x5] ss:$0 sm:$0xff] }
 0x328   :  { %1461 = vmatpush3.bf16.msra.mxu0 %v1603_v48 }
 0x329   :  { %s465_s30 = ssub.f32 %s463_s29, %s464_s28  ;;  %1462 = vmatprep.subr.bf16.mxu0 %v1705_v1 }
 0x32b   :  { %s466_s6 = sadd.f32 1e-05, %s465_s30  ;;  %s1383_s30 = sld [smem:[#allocation3 + $0x1]] }
 0x32c   :  { %1463 = vmatpush3.bf16.msra.mxu0 %v1604_v20 }
 0x32d   :  { %v467_v54 = vstv %s466_s6  ;;  %1464 = vmatprep.subr.bf16.mxu0 %v1705_v1  ;;  %s1709_s6 = smov [#allocation4]  }
 0x32e   :  { %1610 = vrsqrt.f32 %v467_v54 }
 0x330   :  { %1465 = vmatpush3.bf16.msra.mxu0 %v1605_v27 }
 0x331   :  { %1466 = vmatprep.subr.bf16.mxu0 %v1705_v1 }
 0x338   :  { %v1611_v60 = vpop.eup %1610 }
 0x339   :  { %1502 = vpush %v1611_v60 }
 0x33a   :  { %1504 = vpush %v514_v61 }
 0x33b   :  { %1506 = vpush %v531_v62 }
 0x36a   :  { %s1503_s7 = spop %1502 }
 0x36b   :  { %v495_v7 = vstv %s1503_s7  ;;  %s1505_s12 = spop %1504  ;;  %s1331_s7 = sshll.u32 %s1709_s6, 4  ;;  %s1332_s7 = int_to_ptr.vmem [resolvable:$true] %s1331_s7 }
 0x36c   :  { %v579_v8 = vmul.f32 %v573_v0, %v495_v7  ;;  %v580_v10 = vmul.f32 %v574_v2, %v495_v7  ;;  %v581_v11 = vmul.f32 %v575_v3, %v495_v7  ;;  %s1939_s13 = smul.f32 0.0013020834, %s1505_s12  ;;  %s1507_s14 = spop %1506  ;;  %v1606_v7 = vld [vmem:[%s2218_s2 + $0x68] sm:$0xff]  }
 0x36d   :  { %s534_s18 = smul.f32 0.0013020834, %s1507_s14  ;;  %1467 = vmatpush3.bf16.msra.mxu0 %v1606_v7  ;;  %p1683_p6 = scmp.lt.s32.totalorder %s1332_s7, %s1332_s7 }
 0x36e   :  { %v589_v55 = vmul.f32 %v1937_v6, %v579_v8  ;;  %v590_v12 = vmul.f32 %v1937_v6, %v580_v10  ;;  %v591_v16 = vmul.f32 %v1937_v6, %v581_v11  ;;  %s535_s19 = smul.f32 %s1939_s13, %s1939_s13  ;;  %1468 = vmatprep.subr.bf16.mxu0 %v1705_v1 }
 0x370   :  { %v1956_v17 = vadd.f32 %v1947_v49, %v589_v55  ;;  %v1959_v18 = vadd.f32 %v1947_v49, %v590_v12  ;;  %v1962_v19 = vadd.f32 %v1947_v49, %v591_v16  ;;  %s536_s20 = ssub.f32 %s534_s18, %s535_s19  ;;  %v1607_v16 = vld [vmem:[%s2218_s2 + $0x70] sm:$0xff]  }
 0x371   :  { %1469 = vmatpush3.bf16.msra.mxu0 %v1607_v16 }
 0x372   :  { %v605_v21 = vand.u32 2147483647, %v1956_v17  ;;  %v606_v22 = vand.u32 2147483647, %v1959_v18  ;;  %v607_v23 = vand.u32 2147483647, %v1962_v19 }
 0x373   :  { %s537_s0 = sadd.f32 1e-05, %s536_s20  ;;  %vm635_vm11 = vcmp.ge.f32.partialorder %v1956_v17, 0.0  ;;  %vm636_vm12 = vcmp.ge.f32.partialorder %v1959_v18, 0.0  ;;  %vm637_vm13 = vcmp.ge.f32.partialorder %v1962_v19, 0.0 }
 0x374   :  { %v611_v24 = vsub.f32 0.0, %v605_v21  ;;  %v612_v25 = vsub.f32 0.0, %v606_v22  ;;  %v613_v26 = vsub.f32 0.0, %v607_v23 }
 0x375   :  { %v538_v28 = vstv %s537_s0 }
 0x376   :  { %v617_v29 = vmul.f32 1.442695, %v611_v24  ;;  %v619_v30 = vmul.f32 1.442695, %v612_v25  ;;  %v621_v31 = vmul.f32 1.442695, %v613_v26  ;;  %1612 = vrsqrt.f32 %v538_v28 }
 0x378   :  { %1614 = vpow2.f32 %v617_v29 }
 0x379   :  { %1616 = vpow2.f32 %v619_v30 }
 0x37a   :  { %1618 = vpow2.f32 %v621_v31 }
 0x380   :  { %v1613_v32 = vpop.eup %1612 }
 0x381   :  { %1508 = vpush %v1613_v32 }
 0x382   :  { %v1615_v33 = vpop.eup %1614 }
 0x383   :  { %v1617_v34 = vpop.eup %1616  ;;  %v629_v35 = vmul.f32 %v1615_v33, %v1615_v33  ;;  %v641_v36 = vmul.f32 2.0, %v1615_v33  ;;  %v559_v33 = vstv %s1939_s13 }
 0x384   :  { %v1619_v38 = vpop.eup %1618  ;;  %v630_v39 = vmul.f32 %v1617_v34, %v1617_v34  ;;  %v642_v40 = vmul.f32 2.0, %v1617_v34  ;;  %v576_v34 = vsub.f32 %v1906_v4, %v559_v33 }
 0x385   :  { %v631_v41 = vmul.f32 %v1619_v38, %v1619_v38  ;;  %v643_v42 = vmul.f32 2.0, %v1619_v38  ;;  %v647_v43 = vadd.f32 1.0, %v641_v36  ;;  %v665_v44 = vmul.f32 2.0, %v629_v35 }
 0x386   :  { %v648_v45 = vadd.f32 1.0, %v642_v40  ;;  %v666_v46 = vmul.f32 2.0, %v630_v39  ;;  %v677_v50 = vadd.f32 2.0, %v641_v36  ;;  %v678_v51 = vadd.f32 2.0, %v642_v40 }
 0x387   :  { %v649_v52 = vadd.f32 1.0, %v643_v42  ;;  %v667_v53 = vmul.f32 2.0, %v631_v41  ;;  %v671_v54 = vadd.f32 %v665_v44, %v647_v43  ;;  %v679_v57 = vadd.f32 2.0, %v643_v42 }
 0x388   :  { %v672_v56 = vadd.f32 %v666_v46, %v648_v45  ;;  %v683_v58 = vadd.f32 %v677_v50, %v629_v35  ;;  %v684_v59 = vadd.f32 %v678_v51, %v630_v39  ;;  %v653_v2 = vadd.f32 %v641_v36, %v629_v35 }
 0x389   :  { %v673_v60 = vadd.f32 %v667_v53, %v649_v52  ;;  %v685_v61 = vadd.f32 %v679_v57, %v631_v41  ;;  %v654_v3 = vadd.f32 %v642_v40, %v630_v39  ;;  %v655_v5 = vadd.f32 %v643_v42, %v631_v41 }
 0x38a   :  { %v689_v62 = vsel %vm635_vm11, %v671_v54, %v683_v58  ;;  %v690_v63 = vsel %vm636_vm12, %v672_v56, %v684_v59  ;;  %v659_v8 = vsel %vm635_vm11, %v647_v43, %v653_v2  ;;  %v577_v35 = vsub.f32 %v1911_v9, %v559_v33 }
 0x38b   :  { %1620 = vrcp.f32 %v689_v62  ;;  %v691_v0 = vsel %vm637_vm13, %v673_v60, %v685_v61  ;;  %v660_v10 = vsel %vm636_vm12, %v648_v45, %v654_v3  ;;  %v661_v11 = vsel %vm637_vm13, %v649_v52, %v655_v5 }
 0x38c   :  { %1622 = vrcp.f32 %v690_v63  ;;  %v695_v48 = vmul.f32 %v659_v8, %v1956_v17  ;;  %v696_v12 = vmul.f32 %v660_v10, %v1959_v18  ;;  %v697_v21 = vmul.f32 %v661_v11, %v1962_v19 }
 0x38d   :  { %1624 = vrcp.f32 %v691_v0  ;;  %v578_v36 = vsub.f32 %v1915_v13, %v559_v33 }
 0x395   :  { %v1621_v55 = vpop.eup %1620 }
 0x396   :  { %v1623_v20 = vpop.eup %1622  ;;  %v1989_v22 = vmul.f32 %v1621_v55, %v695_v48 }
 0x397   :  { %v1625_v23 = vpop.eup %1624  ;;  %v1991_v24 = vmul.f32 %v1623_v20, %v696_v12 }
 0x398   :  { %v1993_v25 = vmul.f32 %v1625_v23, %v697_v21  ;;  %v731_v17 = vrot.slane %v1989_v22, 1  ;;  %v713_v18 = vrot.slane %v1989_v22, 7 }
 0x399   :  { %v1560_v26 = vpack.i.bf16 %v1991_v24, %v1989_v22  ;;  %v732_v27 = vrot.slane %v1991_v24, 1  ;;  %v714_v19 = vrot.slane %v1991_v24, 7 }
 0x39a   :  { %v733_v28 = vrot.slane %v1993_v25, 1 }
 0x39b   :  { %1561 = vrot.lane.b32.xlu1 %v1560_v26, %s1707_s22  ;;  %v741_v29 = vsel %vm246_vm2, %v731_v17, %v732_v27  ;;  %v2013_v30 = vsel %vm227_vm3, %v713_v18, %v714_v19 }
 0x39c   :  { %v740_v31 = vsel %vm246_vm2, %v732_v27, %v733_v28 }
 0x39d   :  { %v1565_v32 = vpack.i.bf16 %v740_v31, %v741_v29 }
 0x39f   :  { %1566 = vrot.lane.b32.xlu0 %v1565_v32, %s1708_s23 }
 0x3b2   :  { %s1509_s2 = spop %1508 }
 0x3b3   :  { %v566_v38 = vstv %s1509_s2 }
 0x3b4   :  { %v582_v39 = vmul.f32 %v576_v34, %v566_v38  ;;  %v583_v40 = vmul.f32 %v577_v35, %v566_v38  ;;  %v584_v41 = vmul.f32 %v578_v36, %v566_v38 }
 0x3b6   :  { %v592_v42 = vmul.f32 %v1937_v6, %v582_v39  ;;  %v593_v43 = vmul.f32 %v1937_v6, %v583_v40  ;;  %v594_v44 = vmul.f32 %v1937_v6, %v584_v41 }
 0x3b8   :  { %v602_v45 = vadd.f32 %v1947_v49, %v592_v42  ;;  %v603_v46 = vadd.f32 %v1947_v49, %v593_v43  ;;  %v604_v4 = vadd.f32 %v1947_v49, %v594_v44 }
 0x3ba   :  { %v608_v50 = vand.u32 2147483647, %v602_v45  ;;  %v609_v9 = vand.u32 2147483647, %v603_v46  ;;  %v610_v51 = vand.u32 2147483647, %v604_v4 }
 0x3bb   :  { %vm638_vm14 = vcmp.ge.f32.partialorder %v602_v45, 0.0  ;;  %vm639_vm15 = vcmp.ge.f32.partialorder %v603_v46, 0.0  ;;  %vm640_vm1 = vcmp.ge.f32.partialorder %v604_v4, 0.0 }
 0x3bc   :  { %v614_v13 = vsub.f32 0.0, %v608_v50  ;;  %v615_v52 = vsub.f32 0.0, %v609_v9  ;;  %v616_v53 = vsub.f32 0.0, %v610_v51 }
 0x3be   :  { %v623_v54 = vmul.f32 1.442695, %v614_v13  ;;  %v625_v56 = vmul.f32 1.442695, %v615_v52  ;;  %v627_v57 = vmul.f32 1.442695, %v616_v53 }
 0x3c0   :  { %1626 = vpow2.f32 %v623_v54 }
 0x3c1   :  { %1628 = vpow2.f32 %v625_v56 }
 0x3c2   :  { %1630 = vpow2.f32 %v627_v57 }
 0x3ca   :  { %v1627_v58 = vpop.eup %1626 }
 0x3cb   :  { %v1629_v6 = vpop.eup %1628  ;;  %v632_v59 = vmul.f32 %v1627_v58, %v1627_v58  ;;  %v644_v60 = vmul.f32 2.0, %v1627_v58 }
 0x3cc   :  { %v1631_v61 = vpop.eup %1630  ;;  %v633_v62 = vmul.f32 %v1629_v6, %v1629_v6  ;;  %v645_v63 = vmul.f32 2.0, %v1629_v6 }
 0x3cd   :  { %v634_v49 = vmul.f32 %v1631_v61, %v1631_v61  ;;  %v646_v0 = vmul.f32 2.0, %v1631_v61  ;;  %v650_v2 = vadd.f32 1.0, %v644_v60  ;;  %v668_v3 = vmul.f32 2.0, %v632_v59 }
 0x3ce   :  { %v651_v5 = vadd.f32 1.0, %v645_v63  ;;  %v669_v7 = vmul.f32 2.0, %v633_v62  ;;  %v680_v8 = vadd.f32 2.0, %v644_v60  ;;  %v681_v10 = vadd.f32 2.0, %v645_v63 }
 0x3cf   :  { %v652_v11 = vadd.f32 1.0, %v646_v0  ;;  %v670_v48 = vmul.f32 2.0, %v634_v49  ;;  %v674_v55 = vadd.f32 %v668_v3, %v650_v2  ;;  %v682_v12 = vadd.f32 2.0, %v646_v0 }
 0x3d0   :  { %v675_v16 = vadd.f32 %v669_v7, %v651_v5  ;;  %v686_v20 = vadd.f32 %v680_v8, %v632_v59  ;;  %v687_v21 = vadd.f32 %v681_v10, %v633_v62  ;;  %v656_v32 = vadd.f32 %v644_v60, %v632_v59 }
 0x3d1   :  { %v676_v23 = vadd.f32 %v670_v48, %v652_v11  ;;  %v688_v26 = vadd.f32 %v682_v12, %v634_v49  ;;  %v657_v33 = vadd.f32 %v645_v63, %v633_v62  ;;  %v658_v34 = vadd.f32 %v646_v0, %v634_v49 }
 0x3d2   :  { %v692_v27 = vsel %vm638_vm14, %v674_v55, %v686_v20  ;;  %v693_v29 = vsel %vm639_vm15, %v675_v16, %v687_v21  ;;  %v662_v35 = vsel %vm638_vm14, %v650_v2, %v656_v32  ;;  %v715_v55 = vrot.slane %v1993_v25, 7 }
 0x3d3   :  { %v694_v31 = vsel %vm640_vm1, %v676_v23, %v688_v26  ;;  %1632 = vrcp.f32 %v692_v27  ;;  %v663_v36 = vsel %vm639_vm15, %v651_v5, %v657_v33  ;;  %v664_v38 = vsel %vm640_vm1, %v652_v11, %v658_v34 }
 0x3d4   :  { %1634 = vrcp.f32 %v693_v29  ;;  %v698_v39 = vmul.f32 %v662_v35, %v602_v45  ;;  %v699_v41 = vmul.f32 %v663_v36, %v603_v46  ;;  %v700_v43 = vmul.f32 %v664_v38, %v604_v4 }
 0x3d5   :  { %1636 = vrcp.f32 %v694_v31  ;;  %v722_v26 = vsel %vm227_vm3, %v714_v19, %v715_v55 }
 0x3dd   :  { %v1633_v40 = vpop.eup %1632 }
 0x3de   :  { %v1635_v42 = vpop.eup %1634  ;;  %v710_v44 = vmul.f32 %v1633_v40, %v698_v39 }
 0x3df   :  { %v1637_v50 = vpop.eup %1636  ;;  %v711_v9 = vmul.f32 %v1635_v42, %v699_v41 }
 0x3e0   :  { %v712_v51 = vmul.f32 %v1637_v50, %v700_v43  ;;  %v1570_v13 = vpack.i.bf16 %v710_v44, %v1993_v25  ;;  %v716_v52 = vrot.slane %v710_v44, 7  ;;  %v734_v53 = vrot.slane %v710_v44, 1 }
 0x3e1   :  { %v735_v54 = vrot.slane %v711_v9, 1  ;;  %v717_v56 = vrot.slane %v711_v9, 7 }
 0x3e2   :  { %v718_v57 = vrot.slane %v712_v51, 7  ;;  %v1580_v58 = vpack.i.bf16 %v712_v51, %v711_v9  ;;  %1571 = vrot.lane.b32.xlu1 %v1570_v13, %s1707_s22  ;;  %v739_v45 = vsel %vm246_vm2, %v733_v28, %v734_v53  ;;  %v736_v46 = vrot.slane %v712_v51, 1  ;;  %v1364_v13 = vld [vmem:[%s2220_s4 + $0x2] ss:$0 sm:$0xff] }
 0x3e3   :  { %v738_v4 = vsel %vm246_vm2, %v734_v53, %v735_v54  ;;  %v745_v6 = vsel %vm101_vm4, %v739_v45, 0.0  ;;  %v720_v59 = vsel %vm227_vm3, %v716_v52, %v717_v56  ;;  %v721_v21 = vsel %vm227_vm3, %v715_v55, %v716_v52 }
 0x3e4   :  { %1581 = vrot.lane.b32.xlu0 %v1580_v58, %s1707_s22  ;;  %v1575_v60 = vpack.i.bf16 %v738_v4, %v745_v6  ;;  %v742_v61 = vsel %vm246_vm2, %v736_v46, %v731_v17  ;;  %v724_v28 = vsel %vm227_vm3, %v718_v57, %v713_v18  ;;  %v737_v62 = vsel %vm246_vm2, %v735_v54, %v736_v46 }
 0x3e5   :  { %v748_v63 = vsel %vm86_vm5, %v742_v61, 0.0  ;;  %v719_v49 = vsel %vm227_vm3, %v717_v56, %v718_v57  ;;  %v725_v18 = vsel %vm75_vm6, %v724_v28, 0.0  ;;  %v728_v27 = vsel %vm90_vm10, %v721_v21, 0.0 }
 0x3e6   :  { %1576 = vrot.lane.b32.xlu1 %v1575_v60, %s1708_s23  ;;  %v1585_v0 = vpack.i.bf16 %v748_v63, %v737_v62 }
 0x3ea   :  { %1586 = vrot.lane.b32.xlu1 %v1585_v0, %s1708_s23 }
 0x40d   :  { %v1562_v17 = vpop.permute.xlu1 %1561 }
 0x40e   :  { %v1564_v2 = vunpack.i.h.bf16 %v1562_v17  ;;  %v1563_v22 = vunpack.i.l.bf16 %v1562_v17 }
 0x410   :  { %v797_v47 = vsel %vm307_vm7, %v725_v18, %v1563_v22  ;;  %v798_v8 = vsel %vm307_vm7, %v2013_v30, %v1564_v2 }
 0x411   :  { %v1567_v3 = vpop.permute.xlu0 %1566 }
 0x412   :  { %v1569_v5 = vunpack.i.h.bf16 %v1567_v3  ;;  %v1568_v7 = vunpack.i.l.bf16 %v1567_v3 }
 0x414   :  { %v804_v10 = vsel %vm314_vm8, %v798_v8, %v1569_v5  ;;  %v803_v11 = vsel %vm314_vm8, %v797_v47, %v1568_v7 }
 0x415   :  { %v809_v48 = vpack.c.bf16 %v804_v10, %v803_v11 }
 0x417   :  { %1471 = vmatmul.mubr.msk.bf16.vlgmr.msra.gmra.mrb[12].mxu0 %vm364_vm9, %v809_v48 }
 0x418   :  { %1474 = vmatprep.mubr.msk.bf16.mxu0 %vm1706_vm0, %v1705_v1 }
 0x454   :  { %v1572_v12 = vpop.permute.xlu1 %1571 }
 0x455   :  { %v1574_v16 = vunpack.i.h.bf16 %v1572_v12  ;;  %v1573_v20 = vunpack.i.l.bf16 %v1572_v12 }
 0x456   :  { %v1582_v23 = vpop.permute.xlu0 %1581 }
 0x457   :  { %v799_v25 = vsel %vm307_vm7, %v722_v26, %v1573_v20  ;;  %v800_v32 = vsel %vm307_vm7, %v728_v27, %v1574_v16  ;;  %v1584_v33 = vunpack.i.h.bf16 %v1582_v23  ;;  %v1583_v34 = vunpack.i.l.bf16 %v1582_v23 }
 0x458   :  { %v1577_v30 = vpop.permute.xlu1 %1576 }
 0x459   :  { %v1579_v29 = vunpack.i.h.bf16 %v1577_v30  ;;  %v1578_v31 = vunpack.i.l.bf16 %v1577_v30  ;;  %v802_v19 = vsel %vm307_vm7, %v719_v49, %v1584_v33  ;;  %v801_v14 = vsel %vm307_vm7, %v720_v59, %v1583_v34 }
 0x45b   :  { %v805_v35 = vsel %vm314_vm8, %v799_v25, %v1578_v31  ;;  %v806_v36 = vsel %vm314_vm8, %v800_v32, %v1579_v29 }
 0x45c   :  { %v810_v38 = vpack.c.bf16 %v806_v36, %v805_v35  ;;  %v1587_v24 = vpop.permute.xlu1 %1586 }
 0x45d   :  { %v1589_v39 = vunpack.i.h.bf16 %v1587_v24  ;;  %v1588_v40 = vunpack.i.l.bf16 %v1587_v24 }
 0x45e   :  { %1475 = vmatmul.mubr.msk.bf16.gmra.mrb[16].mxu0 %vm364_vm9, %v810_v38 }
 0x45f   :  { %v807_v41 = vsel %vm314_vm8, %v801_v14, %v1588_v40  ;;  %v808_v42 = vsel %vm314_vm8, %v802_v19, %v1589_v39  ;;  %1478 = vmatprep.mubr.msk.bf16.mxu0 %vm1706_vm0, %v1705_v1 }
 0x460   :  { %v811_v43 = vpack.c.bf16 %v808_v42, %v807_v41  ;;  %v2138_v41 = vld [vmem:[%s2219_s3] sm:$0xff]   ;;  %v2145_v42 = vld [vmem:[%s2219_s3 + $0x8] sm:$0xff]  }
 0x461   :  { %1482 = vmatprep.subr.bf16.mxu1 %v2138_v41 }
 0x462   :  { %1483 = vmatpush3.bf16.msra.mxu1 %v2138_v41 }
 0x463   :  { %1484 = vmatprep.subr.bf16.mxu1 %v2145_v42 }
 0x466   :  { %1479 = vmatmul.mubr.msk.bf16.gmra.mrb[20].mxu0 %vm364_vm9, %v811_v43  ;;  %1485 = vmatpush3.bf16.msra.mxu1 %v2145_v42 }
 0x467   :  { %1490 = vmatprep.subr.bf16.mxu1 %v2138_v41 }
 0x4ea   :  { %v895_v44 = vpop.f32.mrb[12].mxu0 }
 0x4eb   :  { %v1472_v50 = vpop.f32.mrb[13].mxu0  ;;  %v2095_v53 = vadd.f32 %v1364_v13, %v895_v44 }
 0x4ec   :  { %v898_v9 = vpop.f32.mrb[14].mxu0 }
 0x4ed   :  { %v1473_v51 = vpop.f32.mrb[15].mxu0  ;;  %v2093_v52 = vadd.f32 %v1364_v13, %v898_v9  ;;  %v932_v1 = vmul.f32 %v2095_v53, %v2095_v53  ;;  %v918_v46 = vsel %vm307_vm7, %v2095_v53, 0.0 }
 0x4ef   :  { %v933_v54 = vmul.f32 %v2093_v52, %v2093_v52  ;;  %v919_v56 = vsel %vm307_vm7, %v2093_v52, 0.0  ;;  %v935_v62 = vsel %vm307_vm7, %v932_v1, 0.0 }
 0x4f0   :  { %v920_v59 = vadd.f32 %v919_v56, %v918_v46 }
 0x4f1   :  { %v936_v4 = vsel %vm307_vm7, %v933_v54, 0.0 }
 0x4f2   :  { %v937_v49 = vadd.f32 %v936_v4, %v935_v62 }
 0x531   :  { %v903_v57 = vpop.f32.mrb[16].mxu0 }
 0x532   :  { %v2103_v58 = vadd.f32 %v1364_v13, %v903_v57  ;;  %v1476_v45 = vpop.f32.mrb[17].mxu0 }
 0x533   :  { %v906_v6 = vpop.f32.mrb[18].mxu0 }
 0x534   :  { %v1477_v60 = vpop.f32.mrb[19].mxu0  ;;  %v921_v61 = vsel %vm307_vm7, %v2103_v58, 0.0  ;;  %v934_v28 = vmul.f32 %v2103_v58, %v2103_v58  ;;  %v2113_v0 = vadd.f32 %v1364_v13, %v906_v6 }
 0x535   :  { %v922_v63 = vadd.f32 %v921_v61, %v920_v59 }
 0x536   :  { %v938_v17 = vsel %vm307_vm7, %v934_v28, 0.0  ;;  %v985_v3 = vmul.f32 %v2113_v0, %v2113_v0  ;;  %v971_v11 = vsel %vm307_vm7, %v2113_v0, 0.0 }
 0x537   :  { %923 = vadd.xlane.f32.xlu0 %v922_v63  ;;  %v939_v2 = vadd.f32 %v938_v17, %v937_v49  ;;  %v2156_v49 = vld [vmem:[%s2220_s4 + $0x4] ss:$0 sm:$0xff] }
 0x538   :  { %v988_v20 = vsel %vm307_vm7, %v985_v3, 0.0 }
 0x539   :  { %940 = vadd.xlane.f32.xlu1 %v939_v2  ;;  %v911_v22 = vpop.f32.mrb[20].mxu0 }
 0x53a   :  { %v2118_v18 = vadd.f32 %v1364_v13, %v911_v22  ;;  %v1480_v5 = vpop.f32.mrb[21].mxu0 }
 0x53b   :  { %v914_v7 = vpop.f32.mrb[22].mxu0 }
 0x53c   :  { %v986_v47 = vmul.f32 %v2118_v18, %v2118_v18  ;;  %v2122_v8 = vadd.f32 %v1364_v13, %v914_v7  ;;  %v1481_v10 = vpop.f32.mrb[23].mxu0  ;;  %v972_v48 = vsel %vm307_vm7, %v2118_v18, 0.0 }
 0x53d   :  { %v973_v55 = vadd.f32 %v972_v48, %v971_v11 }
 0x53e   :  { %v974_v12 = vsel %vm307_vm7, %v2122_v8, 0.0  ;;  %v987_v16 = vmul.f32 %v2122_v8, %v2122_v8  ;;  %v989_v21 = vsel %vm307_vm7, %v986_v47, 0.0 }
 0x53f   :  { %v975_v23 = vadd.f32 %v974_v12, %v973_v55  ;;  %v990_v30 = vadd.f32 %v989_v21, %v988_v20 }
 0x540   :  { %v991_v26 = vsel %vm307_vm7, %v987_v16, 0.0 }
 0x541   :  { %976 = vadd.xlane.f32.xlu0 %v975_v23  ;;  %v992_v27 = vadd.f32 %v991_v26, %v990_v30 }
 0x545   :  { %993 = vadd.xlane.f32.xlu0 %v992_v27 }
 0x5c4   :  { %v924_v29 = vpop.xlane.xlu0 %923 }
 0x5c5   :  { %v925_v31 = vrot.slane %v924_v29, 4 }
 0x5c6   :  { %v941_v25 = vpop.xlane.xlu1 %940 }
 0x5c7   :  { %v926_v32 = vadd.f32 %v925_v31, %v924_v29  ;;  %v942_v33 = vrot.slane %v941_v25, 4 }
 0x5c9   :  { %v927_v34 = vrot.slane %v926_v32, 2  ;;  %v943_v35 = vadd.f32 %v942_v33, %v941_v25 }
 0x5cb   :  { %v944_v36 = vrot.slane %v943_v35, 2  ;;  %v928_v38 = vadd.f32 %v927_v34, %v926_v32 }
 0x5cd   :  { %v929_v24 = vrot.slane %v928_v38, 1  ;;  %v945_v39 = vadd.f32 %v944_v36, %v943_v35 }
 0x5ce   :  { %v977_v43 = vpop.xlane.xlu0 %976 }
 0x5cf   :  { %v930_v40 = vadd.f32 %v929_v24, %v928_v38  ;;  %v946_v19 = vrot.slane %v945_v39, 1  ;;  %v978_v50 = vrot.slane %v977_v43, 4 }
 0x5d1   :  { %1510 = vpush %v930_v40  ;;  %v947_v14 = vadd.f32 %v946_v19, %v945_v39  ;;  %v979_v51 = vadd.f32 %v978_v50, %v977_v43 }
 0x5d2   :  { %v994_v44 = vpop.xlane.xlu0 %993 }
 0x5d3   :  { %1512 = vpush %v947_v14  ;;  %v995_v9 = vrot.slane %v994_v44, 4  ;;  %v980_v54 = vrot.slane %v979_v51, 2 }
 0x5d5   :  { %v996_v13 = vadd.f32 %v995_v9, %v994_v44  ;;  %v981_v57 = vadd.f32 %v980_v54, %v979_v51 }
 0x5d7   :  { %v997_v1 = vrot.slane %v996_v13, 2  ;;  %v982_v46 = vrot.slane %v981_v57, 1 }
 0x5d9   :  { %v998_v45 = vadd.f32 %v997_v1, %v996_v13  ;;  %v983_v59 = vadd.f32 %v982_v46, %v981_v57 }
 0x5db   :  { %v999_v4 = vrot.slane %v998_v45, 1 }
 0x5dd   :  { %v1000_v60 = vadd.f32 %v999_v4, %v998_v45 }
 0x602   :  { %s1511_s11 = spop %1510 }
 0x603   :  { %s949_s12 = smul.f32 0.0013020834, %s1511_s11 }
 0x604   :  { %s1513_s13 = spop %1512 }
 0x605   :  { %s951_s14 = smul.f32 %s949_s12, %s949_s12  ;;  %v957_v61 = vstv %s949_s12 }
 0x606   :  { %s950_s1 = smul.f32 0.0013020834, %s1513_s13  ;;  %v1024_v28 = vsub.f32 %v2095_v53, %v957_v61  ;;  %v1025_v62 = vsub.f32 %v2093_v52, %v957_v61  ;;  %v1026_v63 = vsub.f32 %v2103_v58, %v957_v61  ;;  %v2163_v52 = vld [vmem:[%s2220_s4 + $0x6] ss:$0 sm:$0xff] }
 0x608   :  { %s952_s15 = ssub.f32 %s950_s1, %s951_s14 }
 0x60a   :  { %s953_s3 = sadd.f32 1e-05, %s952_s15 }
 0x60c   :  { %v954_v56 = vstv %s953_s3 }
 0x60d   :  { %1638 = vrsqrt.f32 %v954_v56 }
 0x617   :  { %v1639_v6 = vpop.eup %1638 }
 0x618   :  { %1514 = vpush %v1639_v6 }
 0x619   :  { %1516 = vpush %v983_v59 }
 0x61a   :  { %1518 = vpush %v1000_v60 }
 0x649   :  { %s1515_s16 = spop %1514 }
 0x64a   :  { %v964_v17 = vstv %s1515_s16  ;;  %s1517_s19 = spop %1516 }
 0x64b   :  { %v1030_v2 = vmul.f32 %v1024_v28, %v964_v17  ;;  %v1031_v22 = vmul.f32 %v1025_v62, %v964_v17  ;;  %v1032_v3 = vmul.f32 %v1026_v63, %v964_v17  ;;  %s2158_s20 = smul.f32 0.0013020834, %s1517_s19  ;;  %s1519_s21 = spop %1518 }
 0x64c   :  { %s1003_s25 = smul.f32 0.0013020834, %s1519_s21 }
 0x64d   :  { %v1040_v53 = vmul.f32 %v2156_v49, %v1030_v2  ;;  %v1041_v58 = vmul.f32 %v2156_v49, %v1031_v22  ;;  %v1042_v5 = vmul.f32 %v2156_v49, %v1032_v3  ;;  %s1004_s26 = smul.f32 %s2158_s20, %s2158_s20 }
 0x64f   :  { %v1050_v7 = vadd.f32 %v2163_v52, %v1040_v53  ;;  %v1051_v47 = vadd.f32 %v2163_v52, %v1041_v58  ;;  %v1052_v10 = vadd.f32 %v2163_v52, %v1042_v5  ;;  %s1005_s27 = ssub.f32 %s1003_s25, %s1004_s26 }
 0x651   :  { %v1056_v11 = vand.u32 2147483647, %v1050_v7  ;;  %v1057_v48 = vand.u32 2147483647, %v1051_v47  ;;  %v1058_v55 = vand.u32 2147483647, %v1052_v10 }
 0x652   :  { %s1006_s28 = sadd.f32 1e-05, %s1005_s27  ;;  %vm1086_vm0 = vcmp.ge.f32.partialorder %v1050_v7, 0.0  ;;  %vm1087_vm2 = vcmp.ge.f32.partialorder %v1051_v47, 0.0  ;;  %vm1088_vm3 = vcmp.ge.f32.partialorder %v1052_v10, 0.0 }
 0x653   :  { %v1062_v12 = vsub.f32 0.0, %v1056_v11  ;;  %v1063_v16 = vsub.f32 0.0, %v1057_v48  ;;  %v1064_v20 = vsub.f32 0.0, %v1058_v55 }
 0x654   :  { %v1007_v21 = vstv %s1006_s28 }
 0x655   :  { %v1068_v23 = vmul.f32 1.442695, %v1062_v12  ;;  %v1070_v30 = vmul.f32 1.442695, %v1063_v16  ;;  %v1072_v26 = vmul.f32 1.442695, %v1064_v20  ;;  %1640 = vrsqrt.f32 %v1007_v21 }
 0x657   :  { %1642 = vpow2.f32 %v1068_v23 }
 0x658   :  { %1644 = vpow2.f32 %v1070_v30 }
 0x659   :  { %1646 = vpow2.f32 %v1072_v26 }
 0x65f   :  { %v1641_v27 = vpop.eup %1640 }
 0x660   :  { %1520 = vpush %v1641_v27 }
 0x661   :  { %v1643_v29 = vpop.eup %1642 }
 0x662   :  { %v1645_v31 = vpop.eup %1644  ;;  %v1080_v25 = vmul.f32 %v1643_v29, %v1643_v29  ;;  %v1092_v32 = vmul.f32 2.0, %v1643_v29 }
 0x663   :  { %v1647_v33 = vpop.eup %1646  ;;  %v1081_v34 = vmul.f32 %v1645_v31, %v1645_v31  ;;  %v1093_v35 = vmul.f32 2.0, %v1645_v31 }
 0x664   :  { %v1082_v36 = vmul.f32 %v1647_v33, %v1647_v33  ;;  %v1094_v38 = vmul.f32 2.0, %v1647_v33  ;;  %v1098_v24 = vadd.f32 1.0, %v1092_v32  ;;  %v1116_v40 = vmul.f32 2.0, %v1080_v25 }
 0x665   :  { %v1099_v39 = vadd.f32 1.0, %v1093_v35  ;;  %v1117_v19 = vmul.f32 2.0, %v1081_v34  ;;  %v1128_v50 = vadd.f32 2.0, %v1092_v32  ;;  %v1129_v13 = vadd.f32 2.0, %v1093_v35 }
 0x666   :  { %v1100_v14 = vadd.f32 1.0, %v1094_v38  ;;  %v1118_v43 = vmul.f32 2.0, %v1082_v36  ;;  %v1122_v44 = vadd.f32 %v1116_v40, %v1098_v24  ;;  %v1130_v54 = vadd.f32 2.0, %v1094_v38 }
 0x667   :  { %v1123_v9 = vadd.f32 %v1117_v19, %v1099_v39  ;;  %v1134_v1 = vadd.f32 %v1128_v50, %v1080_v25  ;;  %v1135_v56 = vadd.f32 %v1129_v13, %v1081_v34  ;;  %v1104_v6 = vadd.f32 %v1092_v32, %v1080_v25 }
 0x668   :  { %v1124_v51 = vadd.f32 %v1118_v43, %v1100_v14  ;;  %v1136_v57 = vadd.f32 %v1130_v54, %v1082_v36  ;;  %v1105_v59 = vadd.f32 %v1093_v35, %v1081_v34  ;;  %v1106_v60 = vadd.f32 %v1094_v38, %v1082_v36 }
 0x669   :  { %v1140_v45 = vsel %vm1086_vm0, %v1122_v44, %v1134_v1  ;;  %v1141_v46 = vsel %vm1087_vm2, %v1123_v9, %v1135_v56  ;;  %v1110_v61 = vsel %vm1086_vm0, %v1098_v24, %v1104_v6 }
 0x66a   :  { %v1142_v4 = vsel %vm1088_vm3, %v1124_v51, %v1136_v57  ;;  %1648 = vrcp.f32 %v1140_v45  ;;  %v1111_v28 = vsel %vm1087_vm2, %v1099_v39, %v1105_v59  ;;  %v1112_v62 = vsel %vm1088_vm3, %v1100_v14, %v1106_v60 }
 0x66b   :  { %1650 = vrcp.f32 %v1141_v46  ;;  %v1146_v63 = vmul.f32 %v1110_v61, %v1050_v7  ;;  %v1147_v2 = vmul.f32 %v1111_v28, %v1051_v47  ;;  %v1148_v3 = vmul.f32 %v1112_v62, %v1052_v10 }
 0x66c   :  { %1652 = vrcp.f32 %v1142_v4  ;;  %v1010_v7 = vstv %s2158_s20 }
 0x66d   :  { %v1027_v47 = vsub.f32 %v2113_v0, %v1010_v7  ;;  %v1028_v10 = vsub.f32 %v2118_v18, %v1010_v7  ;;  %v1029_v12 = vsub.f32 %v2122_v8, %v1010_v7 }
 0x674   :  { %v1649_v17 = vpop.eup %1648 }
 0x675   :  { %v1651_v22 = vpop.eup %1650  ;;  %v1158_v53 = vmul.f32 %v1649_v17, %v1146_v63 }
 0x676   :  { %v1653_v58 = vpop.eup %1652  ;;  %v1159_v5 = vmul.f32 %v1651_v22, %v1147_v2 }
 0x677   :  { %v1160_v11 = vmul.f32 %v1653_v58, %v1148_v3 }
 0x678   :  { %v1164_v48 = vpack.c.bf16 %v1159_v5, %v1158_v53 }
 0x679   :  { %v1165_v55 = vpack.c.bf16 %v1160_v11, %v1160_v11 }
 0x67a   :  { %1486 = vmatprep.mubr.msk.bf16.mxu1 %vm307_vm7, %v1164_v48 }
 0x67b   :  { %1487 = vmatmul.mubr.msk.bf16.vlgmr.msra.gmra.mrb[12].mxu1 %vm307_vm7, %v1165_v55 }
 0x67c   :  { %1491 = vmatpush3.bf16.msra.mxu1 %v2138_v41 }
 0x67d   :  { %1492 = vmatprep.subr.bf16.mxu1 %v2145_v42 }
 0x680   :  { %1493 = vmatpush3.bf16.msra.mxu1 %v2145_v42 }
 0x691   :  { %s1521_s29 = spop %1520 }
 0x692   :  { %v1017_v16 = vstv %s1521_s29 }
 0x693   :  { %v1033_v20 = vmul.f32 %v1027_v47, %v1017_v16  ;;  %v1034_v21 = vmul.f32 %v1028_v10, %v1017_v16  ;;  %v1035_v23 = vmul.f32 %v1029_v12, %v1017_v16 }
 0x695   :  { %v1043_v30 = vmul.f32 %v2156_v49, %v1033_v20  ;;  %v1044_v41 = vmul.f32 %v2156_v49, %v1034_v21  ;;  %v1045_v26 = vmul.f32 %v2156_v49, %v1035_v23 }
 0x697   :  { %v1053_v42 = vadd.f32 %v2163_v52, %v1043_v30  ;;  %v1054_v27 = vadd.f32 %v2163_v52, %v1044_v41  ;;  %v1055_v0 = vadd.f32 %v2163_v52, %v1045_v26  ;;  %v1301_v41 = vstv %s1383_s30 }
 0x698   :  { %vm1302_vm9 = vcmp.lt.s32.totalorder %v1800_v15, %v1301_v41  ;;  %vm1304_vm10 = vcmp.lt.s32.totalorder %v1819_v37, %v1301_v41 }
 0x699   :  { %v1059_v29 = vand.u32 2147483647, %v1053_v42  ;;  %v1060_v18 = vand.u32 2147483647, %v1054_v27  ;;  %v1061_v31 = vand.u32 2147483647, %v1055_v0 }
 0x69a   :  { %vm1089_vm4 = vcmp.ge.f32.partialorder %v1053_v42, 0.0  ;;  %vm1090_vm5 = vcmp.ge.f32.partialorder %v1054_v27, 0.0  ;;  %vm1091_vm6 = vcmp.ge.f32.partialorder %v1055_v0, 0.0 }
 0x69b   :  { %v1065_v8 = vsub.f32 0.0, %v1059_v29  ;;  %v1066_v25 = vsub.f32 0.0, %v1060_v18  ;;  %v1067_v32 = vsub.f32 0.0, %v1061_v31 }
 0x69d   :  { %v1074_v33 = vmul.f32 1.442695, %v1065_v8  ;;  %v1076_v34 = vmul.f32 1.442695, %v1066_v25  ;;  %v1078_v35 = vmul.f32 1.442695, %v1067_v32 }
 0x69f   :  { %1654 = vpow2.f32 %v1074_v33 }
 0x6a0   :  { %1656 = vpow2.f32 %v1076_v34 }
 0x6a1   :  { %1658 = vpow2.f32 %v1078_v35 }
 0x6a9   :  { %v1655_v36 = vpop.eup %1654 }
 0x6aa   :  { %v1657_v49 = vpop.eup %1656  ;;  %v1083_v38 = vmul.f32 %v1655_v36, %v1655_v36  ;;  %v1095_v24 = vmul.f32 2.0, %v1655_v36 }
 0x6ab   :  { %v1659_v39 = vpop.eup %1658  ;;  %v1084_v40 = vmul.f32 %v1657_v49, %v1657_v49  ;;  %v1096_v19 = vmul.f32 2.0, %v1657_v49 }
 0x6ac   :  { %v1085_v52 = vmul.f32 %v1659_v39, %v1659_v39  ;;  %v1097_v14 = vmul.f32 2.0, %v1659_v39  ;;  %v1101_v43 = vadd.f32 1.0, %v1095_v24  ;;  %v1119_v50 = vmul.f32 2.0, %v1083_v38 }
 0x6ad   :  { %v1102_v44 = vadd.f32 1.0, %v1096_v19  ;;  %v1120_v9 = vmul.f32 2.0, %v1084_v40  ;;  %v1131_v1 = vadd.f32 2.0, %v1095_v24  ;;  %v1132_v45 = vadd.f32 2.0, %v1096_v19 }
 0x6ae   :  { %v1103_v51 = vadd.f32 1.0, %v1097_v14  ;;  %v1121_v13 = vmul.f32 2.0, %v1085_v52  ;;  %v1125_v54 = vadd.f32 %v1119_v50, %v1101_v43  ;;  %v1133_v46 = vadd.f32 2.0, %v1097_v14 }
 0x6af   :  { %v1126_v56 = vadd.f32 %v1120_v9, %v1102_v44  ;;  %v1137_v4 = vadd.f32 %v1131_v1, %v1083_v38  ;;  %v1138_v6 = vadd.f32 %v1132_v45, %v1084_v40  ;;  %v1107_v62 = vadd.f32 %v1095_v24, %v1083_v38 }
 0x6b0   :  { %v1127_v57 = vadd.f32 %v1121_v13, %v1103_v51  ;;  %v1139_v59 = vadd.f32 %v1133_v46, %v1085_v52  ;;  %v1108_v63 = vadd.f32 %v1096_v19, %v1084_v40  ;;  %v1109_v17 = vadd.f32 %v1097_v14, %v1085_v52 }
 0x6b1   :  { %v1143_v60 = vsel %vm1089_vm4, %v1125_v54, %v1137_v4  ;;  %v1144_v61 = vsel %vm1090_vm5, %v1126_v56, %v1138_v6  ;;  %v1113_v2 = vsel %vm1089_vm4, %v1101_v43, %v1107_v62 }
 0x6b2   :  { %v1145_v28 = vsel %vm1091_vm6, %v1127_v57, %v1139_v59  ;;  %1660 = vrcp.f32 %v1143_v60  ;;  %v1114_v22 = vsel %vm1090_vm5, %v1102_v44, %v1108_v63  ;;  %v1115_v3 = vsel %vm1091_vm6, %v1103_v51, %v1109_v17 }
 0x6b3   :  { %1662 = vrcp.f32 %v1144_v61  ;;  %v1149_v53 = vmul.f32 %v1113_v2, %v1053_v42  ;;  %v1150_v5 = vmul.f32 %v1114_v22, %v1054_v27  ;;  %v1151_v48 = vmul.f32 %v1115_v3, %v1055_v0  ;;  %v1376_v42 = vld [vmem:[%s2220_s4 + $0x7] ss:$0 sm:$0xff]  ;;  %s1236_s4 = sld [smem:[#allocation3]] }
 0x6b4   :  { %1664 = vrcp.f32 %v1145_v28  ;;  %v70_v27 = vadd.s32 8, %v1800_v15 }
 0x6b9   :  { %v1237_v35 = vstv %s1236_s4 }
 0x6ba   :  { %vm1238_vm11 = vcmp.lt.s32.totalorder %v1800_v15, %v1237_v35  ;;  %vm1239_vm12 = vcmp.lt.s32.totalorder %v70_v27, %v1237_v35  ;;  %vm1240_vm13 = vcmp.lt.s32.totalorder %v1819_v37, %v1237_v35 }
 0x6bc   :  { %v1661_v58 = vpop.eup %1660 }
 0x6bd   :  { %v1663_v11 = vpop.eup %1662  ;;  %v1161_v55 = vmul.f32 %v1661_v58, %v1149_v53 }
 0x6be   :  { %v1665_v7 = vpop.eup %1664  ;;  %v1162_v47 = vmul.f32 %v1663_v11, %v1150_v5 }
 0x6bf   :  { %v1163_v10 = vmul.f32 %v1665_v7, %v1151_v48 }
 0x6c0   :  { %v1244_v12 = vpack.c.bf16 %v1162_v47, %v1161_v55 }
 0x6c1   :  { %v1245_v16 = vpack.c.bf16 %v1163_v10, %v1163_v10 }
 0x6c2   :  { %1494 = vmatprep.mubr.msk.bf16.mxu1 %vm307_vm7, %v1244_v12 }
 0x6c3   :  { %1495 = vmatmul.mubr.msk.bf16.vlgmr.msra.gmra.mrb[16].mxu1 %vm307_vm7, %v1245_v16  ;;  %vm1303_vm7 = vcmp.lt.s32.totalorder %v70_v27, %v1301_v41 }
 0x74e   :  { %v1488_v20 = vpop.f32.mrb[12].mxu1 }
 0x74f   :  { %v1222_v21 = vpop.f32.mrb[13].mxu1  ;;  %v1231_v38 = vadd.f32 %v1488_v20, %v1376_v42 }
 0x750   :  { %v1489_v23 = vpop.f32.mrb[14].mxu1  ;;  %v1223_v36 = vadd.f32 %v1376_v42, %v1222_v21 }
 0x751   :  { %v1225_v30 = vpop.f32.mrb[15].mxu1  ;;  %v1243_v43 = vsel %vm1240_vm13, %v1231_v38, 0.0 }
 0x752   :  { %v1226_v49 = vadd.f32 %v1376_v42, %v1225_v30  ;;  %v1241_v24 = vsel %vm1238_vm11, %v1223_v36, 0.0 }
 0x754   :  { %v1242_v19 = vsel %vm1239_vm12, %v1226_v49, 0.0 }
 0x796   :  { %v1496_v26 = vpop.f32.mrb[16].mxu1 }
 0x797   :  { %v1286_v0 = vpop.f32.mrb[17].mxu1  ;;  %v1295_v8 = vadd.f32 %v1496_v26, %v1376_v42 }
 0x798   :  { %v1287_v29 = vadd.f32 %v1376_v42, %v1286_v0  ;;  %v1497_v18 = vpop.f32.mrb[18].mxu1 }
 0x799   :  { %v1289_v31 = vpop.f32.mrb[19].mxu1  ;;  %v1307_v34 = vsel %vm1304_vm10, %v1295_v8, 0.0 }
 0x79a   :  { %v1290_v25 = vadd.f32 %v1376_v42, %v1289_v31  ;;  %v1305_v32 = vsel %vm1302_vm9, %v1287_v29, 0.0 }
 0x79b   :  { %1311 = vrot.lane.b32.xlu1 %v1305_v32, %s1708_s23 }
 0x79c   :  { %v1306_v33 = vsel %vm1303_vm7, %v1290_v25, 0.0 }
 0x79d   :  { %1313 = vrot.lane.b32.xlu0 %v1306_v33, %s1708_s23 }
 0x79f   :  { %1315 = vrot.lane.b32.xlu1 %v1307_v34, %s1708_s23  ;;  %s1678_s23 = scalar_lea.vmem %s1332_s7, 384 }
 0x7a0   :  { %p1679_p5 = scmp.ne.s32.totalorder %s1332_s7, %s1678_s23  ;;  %p1684_p7 = scmp.lt.s32.totalorder %s1678_s23, %s1678_s23 }
 0x7a2   :  { %p1685_p8 = por %p1684_p7, %p1683_p6 }
 0x7a4   :  { %p1686_p9 = pnand %p1685_p8, %p1679_p5 }
 0x80d   :  { %v1312_v39 = vpop.permute.xlu1 %1311 }
 0x80e   :  { %v1320_v40 = vsel %vm314_vm8, %v1241_v24, %v1312_v39 }
 0x80f   :  { %1323 = vst [vmem:[#allocation4] sm:$0xff] %v1320_v40  ;;  %v1314_v52 = vpop.permute.xlu0 %1313 }
 0x810   :  { %v1321_v14 = vsel %vm314_vm8, %v1242_v19, %v1314_v52 }
 0x811   :  { %1324 = vst [vmem:[#allocation4 + $0x8] sm:$0xff] %v1321_v14  ;;  %v1316_v44 = vpop.permute.xlu1 %1315 }
 0x812   :  { %v1322_v15 = vsel %vm314_vm8, %v1243_v43, %v1316_v44 }
 0x813   :  { %1325 = vst [vmem:[#allocation4 + $0x10] sm:$0xff] %v1322_v15 }
 0x814   :  { %1689 = shalt.err (!%p1686_p9)
}
 0x815   :  { %s1690_s10 = scalar_lea.hbm %s2221_s5, 384 }
 0x816   :  { %p1691_p10 = scmp.ne.s32.totalorder %s2221_s5, %s1690_s10  ;;  %p1694_p11 = scmp.lt.u32.totalorder %s1690_s10, %s2221_s5 }
 0x818   :  { %p1696_p12 = pnand %p1694_p11, %p1691_p10 }
 0x81a   :  { %1699 = shalt.err (!%p1696_p12)
}
 0x81b   :  { %s1710_s1 = smov 128   ;;  %s1711_s15 = smov 8  }
 0x81c   :  { %1337 = dma.vmem_to_hbm [thread:$0]  %s1332_s7, 384, %s2221_s5, [#allocation5], %s1710_s1, %s1710_s1, %s1711_s15  }
 0x81d   :  { %1702 = dma.done.wait [#allocation5], 384  }
 0x81e   :  { %1703 = vsyncadd [#allocation5], 4294966912 }
 0x81f   :  { %1341 = vsyncpa [#allocation5], 1 }

</bundles_post_ra>
